<compile_context>
chip_gen: v7x
topology: tpu7x:2x2x1
jax: 0.10.0
libtpu: 0.0.40
codegen_flags: <defaults>
</compile_context>

<pallas_src>
from functools import partial

import jax
import jax.numpy as jnp
from jax import lax
from jax.experimental import pallas as pl
from jax.experimental.pallas import tpu as pltpu

BN_EPS = 1e-5
INV_SQRT2 = 0.7071067811865476
C_BLK = 128  # lane-dense channel block


def _lpi_kernel(x_ref, w1_ref, b1_ref, gamma_ref, beta_ref, w2_ref, b2_ref,
                o_ref, pad_ref):
    B, H, W, Cb = x_ref.shape

    # ---- zero only the 1-pixel halo frame of the scratch (not the interior) ----
    zrow = jnp.zeros((B, 1, W + 2, Cb), jnp.float32)
    pad_ref[:, 0:1, :, :] = zrow
    pad_ref[:, H + 1:H + 2, :, :] = zrow
    zcol = jnp.zeros((B, H + 2, 1, Cb), jnp.float32)
    pad_ref[:, :, 0:1, :] = zcol
    pad_ref[:, :, W + 1:W + 2, :] = zcol

    # ---- stage conv1 input into the halo'd scratch interior ----
    pad_ref[:, 1:H + 1, 1:W + 1, :] = x_ref[...]

    # ---- depthwise 3x3 conv #1: 9 shifted MACs read straight from VMEM ----
    w1 = w1_ref[...]                                           # (3, 3, Cb)
    w1_taps = [[w1[kh, kw].reshape(1, 1, 1, Cb) for kw in range(3)]
               for kh in range(3)]                             # hoisted taps
    acc = pad_ref[:, 0:H, 0:W, :] * w1_taps[0][0]
    for kh in range(3):
        for kw in range(3):
            if kh == 0 and kw == 0:
                continue
            acc = acc + pad_ref[:, kh:kh + H, kw:kw + W, :] * w1_taps[kh][kw]
    y = acc + b1_ref[...]

    # ---- exact GELU (torch.nn.GELU default, erf form) ----
    y = 0.5 * y * (1.0 + lax.erf(y * INV_SQRT2))

    # ---- BatchNorm2d, training-mode batch stats, single-pass f32 sums ----
    # TODO(synk): SyncBatchNorm's cross-device stat reduction is treated as
    # single-device BatchNorm here (identical math on one device).
    inv_n = 1.0 / float(B * H * W)
    s1 = jnp.sum(y, axis=(0, 1, 2), keepdims=True)
    s2 = jnp.sum(y * y, axis=(0, 1, 2), keepdims=True)
    mean = s1 * inv_n
    var = s2 * inv_n - mean * mean                 # biased variance
    scale = gamma_ref[...] * lax.rsqrt(var + BN_EPS)
    shift = beta_ref[...] - mean * scale

    # ---- normalized activation back into the same halo'd scratch interior ----
    pad_ref[:, 1:H + 1, 1:W + 1, :] = y * scale + shift

    # ---- depthwise 3x3 conv #2 ----
    w2 = w2_ref[...]
    w2_taps = [[w2[kh, kw].reshape(1, 1, 1, Cb) for kw in range(3)]
               for kh in range(3)]
    acc2 = pad_ref[:, 0:H, 0:W, :] * w2_taps[0][0]
    for kh in range(3):
        for kw in range(3):
            if kh == 0 and kw == 0:
                continue
            acc2 = acc2 + pad_ref[:, kh:kh + H, kw:kw + W, :] * w2_taps[kh][kw]
    o_ref[...] = (acc2 + b2_ref[...]).astype(o_ref.dtype)


def lpi_forward(x, params, H, W):
    """x: (B, N=H*W, C) float32 tokens -> (B, N, C)."""
    B, N, C = x.shape
    assert N == H * W
    x_nhwc = x.reshape(B, H, W, C)                 # free: no data movement

    # Lane-dense channels: pad C up to a multiple of 128 (no-op for XCiT widths).
    C_pad = ((C + C_BLK - 1) // C_BLK) * C_BLK

    def pad_c(a):
        if C_pad == C:
            return a
        widths = [(0, 0)] * (a.ndim - 1) + [(0, C_pad - C)]
        return jnp.pad(a, widths)

    xp = pad_c(x_nhwc)
    w1 = pad_c(params["w1"])                                   # (3, 3, C_pad)
    w2 = pad_c(params["w2"])
    b1 = pad_c(params["b1"].reshape(1, 1, 1, C))
    b2 = pad_c(params["b2"].reshape(1, 1, 1, C))
    gamma = pad_c(params["gamma"].reshape(1, 1, 1, C))
    beta = pad_c(params["beta"].reshape(1, 1, 1, C))

    n_cblk = C_pad // C_BLK

    x_spec = pl.BlockSpec((B, H, W, C_BLK), lambda c: (0, 0, 0, c))
    w_spec = pl.BlockSpec((3, 3, C_BLK), lambda c: (0, 0, c))
    v_spec = pl.BlockSpec((1, 1, 1, C_BLK), lambda c: (0, 0, 0, c))

    # Explicit VMEM budget: double-buffered in/out blocks + halo scratch + params.
    blk_bytes = B * H * W * C_BLK * 4
    scratch_bytes = B * (H + 2) * (W + 2) * C_BLK * 4
    need = 4 * blk_bytes + scratch_bytes + 32 * C_BLK * 4
    vmem_limit = int(min(max(2 * need, 32 * 1024 * 1024), 100 * 1024 * 1024))

    elems = B * H * W * C_pad
    cost = pl.CostEstimate(
        flops=elems * 50,                  # two 9-tap depthwise MACs + GELU/BN
        transcendentals=elems,             # erf
        bytes_accessed=(2 * elems + 22 * C_pad) * 4,
    )

    out = pl.pallas_call(
        _lpi_kernel,
        out_shape=jax.ShapeDtypeStruct((B, H, W, C_pad), jnp.float32),
        grid=(n_cblk,),
        in_specs=[x_spec, w_spec, v_spec, v_spec, v_spec, w_spec, v_spec],
        out_specs=x_spec,
        scratch_shapes=[pltpu.VMEM((B, H + 2, W + 2, C_BLK), jnp.float32)],
        compiler_params=pltpu.CompilerParams(
            dimension_semantics=("parallel",),
            vmem_limit_bytes=vmem_limit),
        cost_estimate=cost,
    )(xp, w1, b1, gamma, beta, w2, b2)

    if C_pad != C:
        out = out[..., :C]
    return out.reshape(B, N, C)


def lpi_reference(x, params, H, W):
    """Pure-JAX reference mirroring the PyTorch forward (for validation)."""
    B, N, C = x.shape
    x_nchw = x.reshape(B, H, W, C).transpose(0, 3, 1, 2)

    def dwconv(inp, w, b):
        wt = w.transpose(2, 0, 1)[:, None, :, :]   # (C, 1, 3, 3) == torch OIHW
        out = lax.conv_general_dilated(
            inp, wt, window_strides=(1, 1), padding="SAME",
            dimension_numbers=("NCHW", "OIHW", "NCHW"),
            feature_group_count=C)
        return out + b.reshape(1, C, 1, 1)

    y = dwconv(x_nchw, params["w1"], params["b1"])
    y = 0.5 * y * (1.0 + lax.erf(y * INV_SQRT2))
    mean = jnp.mean(y, axis=(0, 2, 3), keepdims=True)
    var = jnp.mean((y - mean) ** 2, axis=(0, 2, 3), keepdims=True)
    y = (y - mean) / jnp.sqrt(var + BN_EPS)
    y = y * params["gamma"].reshape(1, C, 1, 1) + params["beta"].reshape(1, C, 1, 1)
    y = dwconv(y, params["w2"], params["b2"])
    return y.transpose(0, 2, 3, 1).reshape(B, N, C)


def init_params(key, C):
    k1, k2, k3, k4, k5, k6 = jax.random.split(key, 6)
    return {
        # torch Conv2d depthwise weights are (C, 1, 3, 3); stored here as (3, 3, C)
        "w1": 0.2 * jax.random.normal(k1, (3, 3, C), jnp.float32),
        "b1": 0.1 * jax.random.normal(k2, (C,), jnp.float32),
        "w2": 0.2 * jax.random.normal(k3, (3, 3, C), jnp.float32),
        "b2": 0.1 * jax.random.normal(k4, (C,), jnp.float32),
        "gamma": 1.0 + 0.1 * jax.random.normal(k5, (C,), jnp.float32),
        "beta": 0.1 * jax.random.normal(k6, (C,), jnp.float32),
    }


if __name__ == "__main__":
    key = jax.random.PRNGKey(0)
    # Second config exercises a multi-block channel grid (C_pad/128 = 2).
    for (B, H, W, C) in [(2, 8, 8, 16), (2, 8, 8, 256)]:
        N = H * W
        kx, kp, key = jax.random.split(key, 3)
        x = jax.random.normal(kx, (B, N, C), jnp.float32)
        params = init_params(kp, C)

        out = jax.jit(partial(lpi_forward, H=H, W=W))(x, params)
        out = jax.block_until_ready(out)

        ref = lpi_reference(x, params, H, W)
        assert out.shape == (B, N, C)
        err = float(jnp.max(jnp.abs(out - ref)))
        assert jnp.allclose(out, ref, atol=1e-4, rtol=1e-4), err

    print("KERNEL_OK")
</pallas_src>

<mosaic_0001>
module attributes {stable_mosaic.version = 11 : i64} {
  func.func @_lpi_kernel(%arg0: i32, %arg1: memref<2x8x8x128xf32, #tpu.memory_space<vmem>>, %arg2: memref<3x3x128xf32, #tpu.memory_space<vmem>>, %arg3: memref<1x1x1x128xf32, #tpu.memory_space<vmem>>, %arg4: memref<1x1x1x128xf32, #tpu.memory_space<vmem>>, %arg5: memref<1x1x1x128xf32, #tpu.memory_space<vmem>>, %arg6: memref<3x3x128xf32, #tpu.memory_space<vmem>>, %arg7: memref<1x1x1x128xf32, #tpu.memory_space<vmem>>, %arg8: memref<2x8x8x128xf32, #tpu.memory_space<vmem>>, %arg9: memref<2x10x10x128xf32, #tpu.memory_space<vmem>>) attributes {dimension_semantics = [#tpu.dimension_semantics<parallel>], iteration_bounds = array<i64: 1>, scalar_prefetch = 0 : i64, scratch_operands = 1 : i64, tpu.core_type = #tpu.core_type<tc>, window_params = [{transform_indices = @transform_0, window_bounds = array<i64: 2, 8, 8, 128>}, {transform_indices = @transform_1, window_bounds = array<i64: 3, 3, 128>}, {transform_indices = @transform_2, window_bounds = array<i64: 1, 1, 1, 128>}, {transform_indices = @transform_3, window_bounds = array<i64: 1, 1, 1, 128>}, {transform_indices = @transform_4, window_bounds = array<i64: 1, 1, 1, 128>}, {transform_indices = @transform_5, window_bounds = array<i64: 3, 3, 128>}, {transform_indices = @transform_6, window_bounds = array<i64: 1, 1, 1, 128>}, {transform_indices = @transform_7, window_bounds = array<i64: 2, 8, 8, 128>}]} {
    %cst = arith.constant 0.000000e+00 : f32
    %0 = vector.broadcast %cst : f32 to vector<2x1x10x128xf32>
    %c0 = arith.constant 0 : index
    %c0_0 = arith.constant 0 : index
    %c0_1 = arith.constant 0 : index
    %c0_2 = arith.constant 0 : index
    %1 = vector.load %arg9[%c0, %c0_0, %c0_1, %c0_2] : memref<2x10x10x128xf32, #tpu.memory_space<vmem>>, vector<2x1x10x128xf32>
    tpu.vector_store %arg9[%c0, %c0_0, %c0_1, %c0_2], %0 {strides = array<i32>} : memref<2x10x10x128xf32, #tpu.memory_space<vmem>>, vector<2x1x10x128xf32>,
    %c0_3 = arith.constant 0 : index
    %c9 = arith.constant 9 : index
    %c0_4 = arith.constant 0 : index
    %c0_5 = arith.constant 0 : index
    %2 = vector.load %arg9[%c0_3, %c9, %c0_4, %c0_5] : memref<2x10x10x128xf32, #tpu.memory_space<vmem>>, vector<2x1x10x128xf32>
    tpu.vector_store %arg9[%c0_3, %c9, %c0_4, %c0_5], %0 {strides = array<i32>} : memref<2x10x10x128xf32, #tpu.memory_space<vmem>>, vector<2x1x10x128xf32>,
    %cst_6 = arith.constant 0.000000e+00 : f32
    %3 = vector.broadcast %cst_6 : f32 to vector<2x10x1x128xf32>
    %c0_7 = arith.constant 0 : index
    %c0_8 = arith.constant 0 : index
    %c0_9 = arith.constant 0 : index
    %c0_10 = arith.constant 0 : index
    %4 = vector.load %arg9[%c0_7, %c0_8, %c0_9, %c0_10] : memref<2x10x10x128xf32, #tpu.memory_space<vmem>>, vector<2x10x1x128xf32>
    tpu.vector_store %arg9[%c0_7, %c0_8, %c0_9, %c0_10], %3 {strides = array<i32>} : memref<2x10x10x128xf32, #tpu.memory_space<vmem>>, vector<2x10x1x128xf32>,
    %c0_11 = arith.constant 0 : index
    %c0_12 = arith.constant 0 : index
    %c9_13 = arith.constant 9 : index
    %c0_14 = arith.constant 0 : index
    %5 = vector.load %arg9[%c0_11, %c0_12, %c9_13, %c0_14] : memref<2x10x10x128xf32, #tpu.memory_space<vmem>>, vector<2x10x1x128xf32>
    tpu.vector_store %arg9[%c0_11, %c0_12, %c9_13, %c0_14], %3 {strides = array<i32>} : memref<2x10x10x128xf32, #tpu.memory_space<vmem>>, vector<2x10x1x128xf32>,
    %c0_15 = arith.constant 0 : index
    %c0_16 = arith.constant 0 : index
    %c0_17 = arith.constant 0 : index
    %c0_18 = arith.constant 0 : index
    %6 = vector.load %arg1[%c0_15, %c0_16, %c0_17, %c0_18] : memref<2x8x8x128xf32, #tpu.memory_space<vmem>>, vector<2x8x8x128xf32>
    %c0_19 = arith.constant 0 : index
    %c1 = arith.constant 1 : index
    %c1_20 = arith.constant 1 : index
    %c0_21 = arith.constant 0 : index
    %7 = vector.load %arg9[%c0_19, %c1, %c1_20, %c0_21] : memref<2x10x10x128xf32, #tpu.memory_space<vmem>>, vector<2x8x8x128xf32>
    tpu.vector_store %arg9[%c0_19, %c1, %c1_20, %c0_21], %6 {strides = array<i32>} : memref<2x10x10x128xf32, #tpu.memory_space<vmem>>, vector<2x8x8x128xf32>,
    %c0_22 = arith.constant 0 : index
    %c0_23 = arith.constant 0 : index
    %c0_24 = arith.constant 0 : index
    %8 = vector.load %arg2[%c0_22, %c0_23, %c0_24] : memref<3x3x128xf32, #tpu.memory_space<vmem>>, vector<3x3x128xf32>
    %9 = vector.extract_strided_slice %8 {offsets = [0, 0, 0], sizes = [1, 1, 128], strides = [1, 1, 1]} : vector<3x3x128xf32> to vector<1x1x128xf32>
    %10 = vector.shape_cast %9 : vector<1x1x128xf32> to vector<128xf32>
    %11 = vector.shape_cast %10 : vector<128xf32> to vector<1x1x1x128xf32>
    %12 = vector.extract_strided_slice %8 {offsets = [0, 1, 0], sizes = [1, 1, 128], strides = [1, 1, 1]} : vector<3x3x128xf32> to vector<1x1x128xf32>
    %13 = vector.shape_cast %12 : vector<1x1x128xf32> to vector<128xf32>
    %14 = vector.shape_cast %13 : vector<128xf32> to vector<1x1x1x128xf32>
    %15 = vector.extract_strided_slice %8 {offsets = [0, 2, 0], sizes = [1, 1, 128], strides = [1, 1, 1]} : vector<3x3x128xf32> to vector<1x1x128xf32>
    %16 = vector.shape_cast %15 : vector<1x1x128xf32> to vector<128xf32>
    %17 = vector.shape_cast %16 : vector<128xf32> to vector<1x1x1x128xf32>
    %18 = vector.extract_strided_slice %8 {offsets = [1, 0, 0], sizes = [1, 1, 128], strides = [1, 1, 1]} : vector<3x3x128xf32> to vector<1x1x128xf32>
    %19 = vector.shape_cast %18 : vector<1x1x128xf32> to vector<128xf32>
    %20 = vector.shape_cast %19 : vector<128xf32> to vector<1x1x1x128xf32>
    %21 = vector.extract_strided_slice %8 {offsets = [1, 1, 0], sizes = [1, 1, 128], strides = [1, 1, 1]} : vector<3x3x128xf32> to vector<1x1x128xf32>
    %22 = vector.shape_cast %21 : vector<1x1x128xf32> to vector<128xf32>
    %23 = vector.shape_cast %22 : vector<128xf32> to vector<1x1x1x128xf32>
    %24 = vector.extract_strided_slice %8 {offsets = [1, 2, 0], sizes = [1, 1, 128], strides = [1, 1, 1]} : vector<3x3x128xf32> to vector<1x1x128xf32>
    %25 = vector.shape_cast %24 : vector<1x1x128xf32> to vector<128xf32>
    %26 = vector.shape_cast %25 : vector<128xf32> to vector<1x1x1x128xf32>
    %27 = vector.extract_strided_slice %8 {offsets = [2, 0, 0], sizes = [1, 1, 128], strides = [1, 1, 1]} : vector<3x3x128xf32> to vector<1x1x128xf32>
    %28 = vector.shape_cast %27 : vector<1x1x128xf32> to vector<128xf32>
    %29 = vector.shape_cast %28 : vector<128xf32> to vector<1x1x1x128xf32>
    %30 = vector.extract_strided_slice %8 {offsets = [2, 1, 0], sizes = [1, 1, 128], strides = [1, 1, 1]} : vector<3x3x128xf32> to vector<1x1x128xf32>
    %31 = vector.shape_cast %30 : vector<1x1x128xf32> to vector<128xf32>
    %32 = vector.shape_cast %31 : vector<128xf32> to vector<1x1x1x128xf32>
    %33 = vector.extract_strided_slice %8 {offsets = [2, 2, 0], sizes = [1, 1, 128], strides = [1, 1, 1]} : vector<3x3x128xf32> to vector<1x1x128xf32>
    %34 = vector.shape_cast %33 : vector<1x1x128xf32> to vector<128xf32>
    %35 = vector.shape_cast %34 : vector<128xf32> to vector<1x1x1x128xf32>
    %c0_25 = arith.constant 0 : index
    %c0_26 = arith.constant 0 : index
    %c0_27 = arith.constant 0 : index
    %c0_28 = arith.constant 0 : index
    %36 = vector.load %arg9[%c0_25, %c0_26, %c0_27, %c0_28] : memref<2x10x10x128xf32, #tpu.memory_space<vmem>>, vector<2x8x8x128xf32>
    %37 = vector.broadcast %11 : vector<1x1x1x128xf32> to vector<2x8x8x128xf32>
    %38 = arith.mulf %36, %37 : vector<2x8x8x128xf32>
    %c0_29 = arith.constant 0 : index
    %c0_30 = arith.constant 0 : index
    %c1_31 = arith.constant 1 : index
    %c0_32 = arith.constant 0 : index
    %39 = vector.load %arg9[%c0_29, %c0_30, %c1_31, %c0_32] : memref<2x10x10x128xf32, #tpu.memory_space<vmem>>, vector<2x8x8x128xf32>
    %40 = vector.broadcast %14 : vector<1x1x1x128xf32> to vector<2x8x8x128xf32>
    %41 = arith.mulf %39, %40 : vector<2x8x8x128xf32>
    %42 = arith.addf %38, %41 : vector<2x8x8x128xf32>
    %c0_33 = arith.constant 0 : index
    %c0_34 = arith.constant 0 : index
    %c2 = arith.constant 2 : index
    %c0_35 = arith.constant 0 : index
    %43 = vector.load %arg9[%c0_33, %c0_34, %c2, %c0_35] : memref<2x10x10x128xf32, #tpu.memory_space<vmem>>, vector<2x8x8x128xf32>
    %44 = vector.broadcast %17 : vector<1x1x1x128xf32> to vector<2x8x8x128xf32>
    %45 = arith.mulf %43, %44 : vector<2x8x8x128xf32>
    %46 = arith.addf %42, %45 : vector<2x8x8x128xf32>
    %c0_36 = arith.constant 0 : index
    %c1_37 = arith.constant 1 : index
    %c0_38 = arith.constant 0 : index
    %c0_39 = arith.constant 0 : index
    %47 = vector.load %arg9[%c0_36, %c1_37, %c0_38, %c0_39] : memref<2x10x10x128xf32, #tpu.memory_space<vmem>>, vector<2x8x8x128xf32>
    %48 = vector.broadcast %20 : vector<1x1x1x128xf32> to vector<2x8x8x128xf32>
    %49 = arith.mulf %47, %48 : vector<2x8x8x128xf32>
    %50 = arith.addf %46, %49 : vector<2x8x8x128xf32>
    %c0_40 = arith.constant 0 : index
    %c1_41 = arith.constant 1 : index
    %c1_42 = arith.constant 1 : index
    %c0_43 = arith.constant 0 : index
    %51 = vector.load %arg9[%c0_40, %c1_41, %c1_42, %c0_43] : memref<2x10x10x128xf32, #tpu.memory_space<vmem>>, vector<2x8x8x128xf32>
    %52 = vector.broadcast %23 : vector<1x1x1x128xf32> to vector<2x8x8x128xf32>
    %53 = arith.mulf %51, %52 : vector<2x8x8x128xf32>
    %54 = arith.addf %50, %53 : vector<2x8x8x128xf32>
    %c0_44 = arith.constant 0 : index
    %c1_45 = arith.constant 1 : index
    %c2_46 = arith.constant 2 : index
    %c0_47 = arith.constant 0 : index
    %55 = vector.load %arg9[%c0_44, %c1_45, %c2_46, %c0_47] : memref<2x10x10x128xf32, #tpu.memory_space<vmem>>, vector<2x8x8x128xf32>
    %56 = vector.broadcast %26 : vector<1x1x1x128xf32> to vector<2x8x8x128xf32>
    %57 = arith.mulf %55, %56 : vector<2x8x8x128xf32>
    %58 = arith.addf %54, %57 : vector<2x8x8x128xf32>
    %c0_48 = arith.constant 0 : index
    %c2_49 = arith.constant 2 : index
    %c0_50 = arith.constant 0 : index
    %c0_51 = arith.constant 0 : index
    %59 = vector.load %arg9[%c0_48, %c2_49, %c0_50, %c0_51] : memref<2x10x10x128xf32, #tpu.memory_space<vmem>>, vector<2x8x8x128xf32>
    %60 = vector.broadcast %29 : vector<1x1x1x128xf32> to vector<2x8x8x128xf32>
    %61 = arith.mulf %59, %60 : vector<2x8x8x128xf32>
    %62 = arith.addf %58, %61 : vector<2x8x8x128xf32>
    %c0_52 = arith.constant 0 : index
    %c2_53 = arith.constant 2 : index
    %c1_54 = arith.constant 1 : index
    %c0_55 = arith.constant 0 : index
    %63 = vector.load %arg9[%c0_52, %c2_53, %c1_54, %c0_55] : memref<2x10x10x128xf32, #tpu.memory_space<vmem>>, vector<2x8x8x128xf32>
    %64 = vector.broadcast %32 : vector<1x1x1x128xf32> to vector<2x8x8x128xf32>
    %65 = arith.mulf %63, %64 : vector<2x8x8x128xf32>
    %66 = arith.addf %62, %65 : vector<2x8x8x128xf32>
    %c0_56 = arith.constant 0 : index
    %c2_57 = arith.constant 2 : index
    %c2_58 = arith.constant 2 : index
    %c0_59 = arith.constant 0 : index
    %67 = vector.load %arg9[%c0_56, %c2_57, %c2_58, %c0_59] : memref<2x10x10x128xf32, #tpu.memory_space<vmem>>, vector<2x8x8x128xf32>
    %68 = vector.broadcast %35 : vector<1x1x1x128xf32> to vector<2x8x8x128xf32>
    %69 = arith.mulf %67, %68 : vector<2x8x8x128xf32>
    %70 = arith.addf %66, %69 : vector<2x8x8x128xf32>
    %c0_60 = arith.constant 0 : index
    %c0_61 = arith.constant 0 : index
    %c0_62 = arith.constant 0 : index
    %c0_63 = arith.constant 0 : index
    %71 = vector.load %arg3[%c0_60, %c0_61, %c0_62, %c0_63] : memref<1x1x1x128xf32, #tpu.memory_space<vmem>>, vector<1x1x1x128xf32>
    %72 = vector.broadcast %71 : vector<1x1x1x128xf32> to vector<2x8x8x128xf32>
    %73 = arith.addf %70, %72 : vector<2x8x8x128xf32>
    %cst_64 = arith.constant 5.000000e-01 : f32
    %74 = vector.broadcast %cst_64 : f32 to vector<2x8x8x128xf32>
    %75 = arith.mulf %74, %73 : vector<2x8x8x128xf32>
    %cst_65 = arith.constant 0.707106769 : f32
    %76 = vector.broadcast %cst_65 : f32 to vector<2x8x8x128xf32>
    %77 = arith.mulf %73, %76 : vector<2x8x8x128xf32>
    %78 = math.erf %77 : vector<2x8x8x128xf32>
    %cst_66 = arith.constant 1.000000e+00 : f32
    %79 = vector.broadcast %cst_66 : f32 to vector<2x8x8x128xf32>
    %80 = arith.addf %79, %78 : vector<2x8x8x128xf32>
    %81 = arith.mulf %75, %80 : vector<2x8x8x128xf32>
    %cst_67 = arith.constant dense<0.000000e+00> : vector<128xf32>
    %82 = vector.multi_reduction <add>, %81, %cst_67 [0, 1, 2] : vector<2x8x8x128xf32> to vector<128xf32>
    %83 = vector.shape_cast %82 : vector<128xf32> to vector<1x1x1x128xf32>
    %84 = arith.mulf %81, %81 : vector<2x8x8x128xf32>
    %cst_68 = arith.constant dense<0.000000e+00> : vector<128xf32>
    %85 = vector.multi_reduction <add>, %84, %cst_68 [0, 1, 2] : vector<2x8x8x128xf32> to vector<128xf32>
    %86 = vector.shape_cast %85 : vector<128xf32> to vector<1x1x1x128xf32>
    %cst_69 = arith.constant 7.812500e-03 : f32
    %87 = vector.broadcast %cst_69 : f32 to vector<1x1x1x128xf32>
    %88 = arith.mulf %83, %87 : vector<1x1x1x128xf32>
    %cst_70 = arith.constant 7.812500e-03 : f32
    %89 = vector.broadcast %cst_70 : f32 to vector<1x1x1x128xf32>
    %90 = arith.mulf %86, %89 : vector<1x1x1x128xf32>
    %91 = arith.mulf %88, %88 : vector<1x1x1x128xf32>
    %92 = arith.subf %90, %91 : vector<1x1x1x128xf32>
    %c0_71 = arith.constant 0 : index
    %c0_72 = arith.constant 0 : index
    %c0_73 = arith.constant 0 : index
    %c0_74 = arith.constant 0 : index
    %93 = vector.load %arg4[%c0_71, %c0_72, %c0_73, %c0_74] : memref<1x1x1x128xf32, #tpu.memory_space<vmem>>, vector<1x1x1x128xf32>
    %cst_75 = arith.constant 9.99999974E-6 : f32
    %94 = vector.broadcast %cst_75 : f32 to vector<1x1x1x128xf32>
    %95 = arith.addf %92, %94 : vector<1x1x1x128xf32>
    %96 = math.rsqrt %95 : vector<1x1x1x128xf32>
    %97 = arith.mulf %93, %96 : vector<1x1x1x128xf32>
    %c0_76 = arith.constant 0 : index
    %c0_77 = arith.constant 0 : index
    %c0_78 = arith.constant 0 : index
    %c0_79 = arith.constant 0 : index
    %98 = vector.load %arg5[%c0_76, %c0_77, %c0_78, %c0_79] : memref<1x1x1x128xf32, #tpu.memory_space<vmem>>, vector<1x1x1x128xf32>
    %99 = arith.mulf %88, %97 : vector<1x1x1x128xf32>
    %100 = arith.subf %98, %99 : vector<1x1x1x128xf32>
    %101 = vector.broadcast %97 : vector<1x1x1x128xf32> to vector<2x8x8x128xf32>
    %102 = arith.mulf %81, %101 : vector<2x8x8x128xf32>
    %103 = vector.broadcast %100 : vector<1x1x1x128xf32> to vector<2x8x8x128xf32>
    %104 = arith.addf %102, %103 : vector<2x8x8x128xf32>
    %c0_80 = arith.constant 0 : index
    %c1_81 = arith.constant 1 : index
    %c1_82 = arith.constant 1 : index
    %c0_83 = arith.constant 0 : index
    %105 = vector.load %arg9[%c0_80, %c1_81, %c1_82, %c0_83] : memref<2x10x10x128xf32, #tpu.memory_space<vmem>>, vector<2x8x8x128xf32>
    tpu.vector_store %arg9[%c0_80, %c1_81, %c1_82, %c0_83], %104 {strides = array<i32>} : memref<2x10x10x128xf32, #tpu.memory_space<vmem>>, vector<2x8x8x128xf32>,
    %c0_84 = arith.constant 0 : index
    %c0_85 = arith.constant 0 : index
    %c0_86 = arith.constant 0 : index
    %106 = vector.load %arg6[%c0_84, %c0_85, %c0_86] : memref<3x3x128xf32, #tpu.memory_space<vmem>>, vector<3x3x128xf32>
    %107 = vector.extract_strided_slice %106 {offsets = [0, 0, 0], sizes = [1, 1, 128], strides = [1, 1, 1]} : vector<3x3x128xf32> to vector<1x1x128xf32>
    %108 = vector.shape_cast %107 : vector<1x1x128xf32> to vector<128xf32>
    %109 = vector.shape_cast %108 : vector<128xf32> to vector<1x1x1x128xf32>
    %110 = vector.extract_strided_slice %106 {offsets = [0, 1, 0], sizes = [1, 1, 128], strides = [1, 1, 1]} : vector<3x3x128xf32> to vector<1x1x128xf32>
    %111 = vector.shape_cast %110 : vector<1x1x128xf32> to vector<128xf32>
    %112 = vector.shape_cast %111 : vector<128xf32> to vector<1x1x1x128xf32>
    %113 = vector.extract_strided_slice %106 {offsets = [0, 2, 0], sizes = [1, 1, 128], strides = [1, 1, 1]} : vector<3x3x128xf32> to vector<1x1x128xf32>
    %114 = vector.shape_cast %113 : vector<1x1x128xf32> to vector<128xf32>
    %115 = vector.shape_cast %114 : vector<128xf32> to vector<1x1x1x128xf32>
    %116 = vector.extract_strided_slice %106 {offsets = [1, 0, 0], sizes = [1, 1, 128], strides = [1, 1, 1]} : vector<3x3x128xf32> to vector<1x1x128xf32>
    %117 = vector.shape_cast %116 : vector<1x1x128xf32> to vector<128xf32>
    %118 = vector.shape_cast %117 : vector<128xf32> to vector<1x1x1x128xf32>
    %119 = vector.extract_strided_slice %106 {offsets = [1, 1, 0], sizes = [1, 1, 128], strides = [1, 1, 1]} : vector<3x3x128xf32> to vector<1x1x128xf32>
    %120 = vector.shape_cast %119 : vector<1x1x128xf32> to vector<128xf32>
    %121 = vector.shape_cast %120 : vector<128xf32> to vector<1x1x1x128xf32>
    %122 = vector.extract_strided_slice %106 {offsets = [1, 2, 0], sizes = [1, 1, 128], strides = [1, 1, 1]} : vector<3x3x128xf32> to vector<1x1x128xf32>
    %123 = vector.shape_cast %122 : vector<1x1x128xf32> to vector<128xf32>
    %124 = vector.shape_cast %123 : vector<128xf32> to vector<1x1x1x128xf32>
    %125 = vector.extract_strided_slice %106 {offsets = [2, 0, 0], sizes = [1, 1, 128], strides = [1, 1, 1]} : vector<3x3x128xf32> to vector<1x1x128xf32>
    %126 = vector.shape_cast %125 : vector<1x1x128xf32> to vector<128xf32>
    %127 = vector.shape_cast %126 : vector<128xf32> to vector<1x1x1x128xf32>
    %128 = vector.extract_strided_slice %106 {offsets = [2, 1, 0], sizes = [1, 1, 128], strides = [1, 1, 1]} : vector<3x3x128xf32> to vector<1x1x128xf32>
    %129 = vector.shape_cast %128 : vector<1x1x128xf32> to vector<128xf32>
    %130 = vector.shape_cast %129 : vector<128xf32> to vector<1x1x1x128xf32>
    %131 = vector.extract_strided_slice %106 {offsets = [2, 2, 0], sizes = [1, 1, 128], strides = [1, 1, 1]} : vector<3x3x128xf32> to vector<1x1x128xf32>
    %132 = vector.shape_cast %131 : vector<1x1x128xf32> to vector<128xf32>
    %133 = vector.shape_cast %132 : vector<128xf32> to vector<1x1x1x128xf32>
    %c0_87 = arith.constant 0 : index
    %c0_88 = arith.constant 0 : index
    %c0_89 = arith.constant 0 : index
    %c0_90 = arith.constant 0 : index
    %134 = vector.load %arg9[%c0_87, %c0_88, %c0_89, %c0_90] : memref<2x10x10x128xf32, #tpu.memory_space<vmem>>, vector<2x8x8x128xf32>
    %135 = vector.broadcast %109 : vector<1x1x1x128xf32> to vector<2x8x8x128xf32>
    %136 = arith.mulf %134, %135 : vector<2x8x8x128xf32>
    %c0_91 = arith.constant 0 : index
    %c0_92 = arith.constant 0 : index
    %c1_93 = arith.constant 1 : index
    %c0_94 = arith.constant 0 : index
    %137 = vector.load %arg9[%c0_91, %c0_92, %c1_93, %c0_94] : memref<2x10x10x128xf32, #tpu.memory_space<vmem>>, vector<2x8x8x128xf32>
    %138 = vector.broadcast %112 : vector<1x1x1x128xf32> to vector<2x8x8x128xf32>
    %139 = arith.mulf %137, %138 : vector<2x8x8x128xf32>
    %140 = arith.addf %136, %139 : vector<2x8x8x128xf32>
    %c0_95 = arith.constant 0 : index
    %c0_96 = arith.constant 0 : index
    %c2_97 = arith.constant 2 : index
    %c0_98 = arith.constant 0 : index
    %141 = vector.load %arg9[%c0_95, %c0_96, %c2_97, %c0_98] : memref<2x10x10x128xf32, #tpu.memory_space<vmem>>, vector<2x8x8x128xf32>
    %142 = vector.broadcast %115 : vector<1x1x1x128xf32> to vector<2x8x8x128xf32>
    %143 = arith.mulf %141, %142 : vector<2x8x8x128xf32>
    %144 = arith.addf %140, %143 : vector<2x8x8x128xf32>
    %c0_99 = arith.constant 0 : index
    %c1_100 = arith.constant 1 : index
    %c0_101 = arith.constant 0 : index
    %c0_102 = arith.constant 0 : index
    %145 = vector.load %arg9[%c0_99, %c1_100, %c0_101, %c0_102] : memref<2x10x10x128xf32, #tpu.memory_space<vmem>>, vector<2x8x8x128xf32>
    %146 = vector.broadcast %118 : vector<1x1x1x128xf32> to vector<2x8x8x128xf32>
    %147 = arith.mulf %145, %146 : vector<2x8x8x128xf32>
    %148 = arith.addf %144, %147 : vector<2x8x8x128xf32>
    %c0_103 = arith.constant 0 : index
    %c1_104 = arith.constant 1 : index
    %c1_105 = arith.constant 1 : index
    %c0_106 = arith.constant 0 : index
    %149 = vector.load %arg9[%c0_103, %c1_104, %c1_105, %c0_106] : memref<2x10x10x128xf32, #tpu.memory_space<vmem>>, vector<2x8x8x128xf32>
    %150 = vector.broadcast %121 : vector<1x1x1x128xf32> to vector<2x8x8x128xf32>
    %151 = arith.mulf %149, %150 : vector<2x8x8x128xf32>
    %152 = arith.addf %148, %151 : vector<2x8x8x128xf32>
    %c0_107 = arith.constant 0 : index
    %c1_108 = arith.constant 1 : index
    %c2_109 = arith.constant 2 : index
    %c0_110 = arith.constant 0 : index
    %153 = vector.load %arg9[%c0_107, %c1_108, %c2_109, %c0_110] : memref<2x10x10x128xf32, #tpu.memory_space<vmem>>, vector<2x8x8x128xf32>
    %154 = vector.broadcast %124 : vector<1x1x1x128xf32> to vector<2x8x8x128xf32>
    %155 = arith.mulf %153, %154 : vector<2x8x8x128xf32>
    %156 = arith.addf %152, %155 : vector<2x8x8x128xf32>
    %c0_111 = arith.constant 0 : index
    %c2_112 = arith.constant 2 : index
    %c0_113 = arith.constant 0 : index
    %c0_114 = arith.constant 0 : index
    %157 = vector.load %arg9[%c0_111, %c2_112, %c0_113, %c0_114] : memref<2x10x10x128xf32, #tpu.memory_space<vmem>>, vector<2x8x8x128xf32>
    %158 = vector.broadcast %127 : vector<1x1x1x128xf32> to vector<2x8x8x128xf32>
    %159 = arith.mulf %157, %158 : vector<2x8x8x128xf32>
    %160 = arith.addf %156, %159 : vector<2x8x8x128xf32>
    %c0_115 = arith.constant 0 : index
    %c2_116 = arith.constant 2 : index
    %c1_117 = arith.constant 1 : index
    %c0_118 = arith.constant 0 : index
    %161 = vector.load %arg9[%c0_115, %c2_116, %c1_117, %c0_118] : memref<2x10x10x128xf32, #tpu.memory_space<vmem>>, vector<2x8x8x128xf32>
    %162 = vector.broadcast %130 : vector<1x1x1x128xf32> to vector<2x8x8x128xf32>
    %163 = arith.mulf %161, %162 : vector<2x8x8x128xf32>
    %164 = arith.addf %160, %163 : vector<2x8x8x128xf32>
    %c0_119 = arith.constant 0 : index
    %c2_120 = arith.constant 2 : index
    %c2_121 = arith.constant 2 : index
    %c0_122 = arith.constant 0 : index
    %165 = vector.load %arg9[%c0_119, %c2_120, %c2_121, %c0_122] : memref<2x10x10x128xf32, #tpu.memory_space<vmem>>, vector<2x8x8x128xf32>
    %166 = vector.broadcast %133 : vector<1x1x1x128xf32> to vector<2x8x8x128xf32>
    %167 = arith.mulf %165, %166 : vector<2x8x8x128xf32>
    %168 = arith.addf %164, %167 : vector<2x8x8x128xf32>
    %c0_123 = arith.constant 0 : index
    %c0_124 = arith.constant 0 : index
    %c0_125 = arith.constant 0 : index
    %c0_126 = arith.constant 0 : index
    %169 = vector.load %arg7[%c0_123, %c0_124, %c0_125, %c0_126] : memref<1x1x1x128xf32, #tpu.memory_space<vmem>>, vector<1x1x1x128xf32>
    %170 = vector.broadcast %169 : vector<1x1x1x128xf32> to vector<2x8x8x128xf32>
    %171 = arith.addf %168, %170 : vector<2x8x8x128xf32>
    %c0_127 = arith.constant 0 : index
    %c0_128 = arith.constant 0 : index
    %c0_129 = arith.constant 0 : index
    %c0_130 = arith.constant 0 : index
    %172 = vector.load %arg8[%c0_127, %c0_128, %c0_129, %c0_130] : memref<2x8x8x128xf32, #tpu.memory_space<vmem>>, vector<2x8x8x128xf32>
    tpu.vector_store %arg8[%c0_127, %c0_128, %c0_129, %c0_130], %171 {strides = array<i32>} : memref<2x8x8x128xf32, #tpu.memory_space<vmem>>, vector<2x8x8x128xf32>,
    return
  }
  func.func @transform_0(%arg0: i32) -> (i32, i32, i32, i32) {
    %c0_i32 = arith.constant 0 : i32
    %c0_i32_0 = arith.constant 0 : i32
    %c0_i32_1 = arith.constant 0 : i32
    %c0_i32_2 = arith.constant 0 : i32
    return %c0_i32, %c0_i32_0, %c0_i32_1, %arg0 : i32, i32, i32, i32
  }
  func.func @transform_1(%arg0: i32) -> (i32, i32, i32) {
    %c0_i32 = arith.constant 0 : i32
    %c0_i32_0 = arith.constant 0 : i32
    %c0_i32_1 = arith.constant 0 : i32
    return %c0_i32, %c0_i32_0, %arg0 : i32, i32, i32
  }
  func.func @transform_2(%arg0: i32) -> (i32, i32, i32, i32) {
    %c0_i32 = arith.constant 0 : i32
    %c0_i32_0 = arith.constant 0 : i32
    %c0_i32_1 = arith.constant 0 : i32
    %c0_i32_2 = arith.constant 0 : i32
    return %c0_i32, %c0_i32_0, %c0_i32_1, %arg0 : i32, i32, i32, i32
  }
  func.func @transform_3(%arg0: i32) -> (i32, i32, i32, i32) {
    %c0_i32 = arith.constant 0 : i32
    %c0_i32_0 = arith.constant 0 : i32
    %c0_i32_1 = arith.constant 0 : i32
    %c0_i32_2 = arith.constant 0 : i32
    return %c0_i32, %c0_i32_0, %c0_i32_1, %arg0 : i32, i32, i32, i32
  }
  func.func @transform_4(%arg0: i32) -> (i32, i32, i32, i32) {
    %c0_i32 = arith.constant 0 : i32
    %c0_i32_0 = arith.constant 0 : i32
    %c0_i32_1 = arith.constant 0 : i32
    %c0_i32_2 = arith.constant 0 : i32
    return %c0_i32, %c0_i32_0, %c0_i32_1, %arg0 : i32, i32, i32, i32
  }
  func.func @transform_5(%arg0: i32) -> (i32, i32, i32) {
    %c0_i32 = arith.constant 0 : i32
    %c0_i32_0 = arith.constant 0 : i32
    %c0_i32_1 = arith.constant 0 : i32
    return %c0_i32, %c0_i32_0, %arg0 : i32, i32, i32
  }
  func.func @transform_6(%arg0: i32) -> (i32, i32, i32, i32) {
    %c0_i32 = arith.constant 0 : i32
    %c0_i32_0 = arith.constant 0 : i32
    %c0_i32_1 = arith.constant 0 : i32
    %c0_i32_2 = arith.constant 0 : i32
    return %c0_i32, %c0_i32_0, %c0_i32_1, %arg0 : i32, i32, i32, i32
  }
  func.func @transform_7(%arg0: i32) -> (i32, i32, i32, i32) {
    %c0_i32 = arith.constant 0 : i32
    %c0_i32_0 = arith.constant 0 : i32
    %c0_i32_1 = arith.constant 0 : i32
    %c0_i32_2 = arith.constant 0 : i32
    return %c0_i32, %c0_i32_0, %c0_i32_1, %arg0 : i32, i32, i32, i32
  }
}

</mosaic_0001>

<bundles_post_ra>
// kernel: lpi_forward.1
= control target key start
LH: loop header
LB: loop body
LE: loop exit
PB: predicated region body
PF: predicated region fallthrough
CT: control target
= control target key end

     0   :  { %v127_v0 = vlaneseq  ;;  %v1331_v1 = vmov 0.0   ;;  %s2417_s1 = inlined_call_operand.vmem [shape: f32[3,3,128], index: 1, kind: input, shape index: {}]   ;;  %s2418_s0 = inlined_call_operand.vmem [shape: f32[2,8,8,128], index: 0, kind: input, shape index: {}]   ;;  %s2419_s2 = inlined_call_operand.vmem [shape: f32[1,1,1,128], index: 2, kind: input, shape index: {}]   ;;  %s2420_s5 = inlined_call_operand.vmem [shape: f32[3,3,128], index: 5, kind: input, shape index: {}]   ;;  %s2421_s3 = inlined_call_operand.vmem [shape: f32[1,1,1,128], index: 3, kind: input, shape index: {}]   ;;  %s2422_s4 = inlined_call_operand.vmem [shape: f32[1,1,1,128], index: 4, kind: input, shape index: {}]   ;;  %s2423_s6 = inlined_call_operand.vmem [shape: f32[1,1,1,128], index: 6, kind: input, shape index: {}]   ;;  %s2424_s7 = inlined_call_operand.vmem [shape: f32[2,8,8,128], index: 7, kind: output, shape index: {}]  }
   0x1   :  { %26 = vst [vmem:[#allocation2] sm:$0xff] %v1331_v1  ;;  %27 = vst [vmem:[#allocation2 + $0x8] sm:$0x3] %v1331_v1  ;;  %v1375_v2 = vld [vmem:[%s2418_s0] sm:$0xff]  ;;  %v1381_v4 = vld [vmem:[%s2418_s0 + $0x8] sm:$0xff] }
   0x2   :  { %28 = vst [vmem:[#allocation2 + $0xa0] sm:$0xff] %v1331_v1  ;;  %29 = vst [vmem:[#allocation2 + $0xa8] sm:$0x3] %v1331_v1  ;;  %v128_v3 = vshrl.u32 %v127_v0, 7  ;;  %v1386_v5 = vld [vmem:[%s2418_s0 + $0x10] sm:$0xff]  ;;  %v1396_v7 = vld [vmem:[%s2418_s0 + $0x18] sm:$0xff] }
   0x3   :  { %31 = vst [vmem:[#allocation2 + $0x90] sm:$0xff] %v1331_v1  ;;  %32 = vst [vmem:[#allocation2 + $0x98] sm:$0x3] %v1331_v1  ;;  %v108_v6 = vld [vmem:[%s2417_s1] sm:$0x7]  ;;  %v1412_v11 = vld [vmem:[%s2418_s0 + $0x28] sm:$0xff] }
   0x4   :  { %33 = vst [vmem:[#allocation2 + $0x130] sm:$0xff] %v1331_v1  ;;  %34 = vst [vmem:[#allocation2 + $0x138] sm:$0x3] %v1331_v1  ;;  %v1401_v8 = vld [vmem:[%s2418_s0 + $0x20] sm:$0xff]  ;;  %v1403_v9 = vsub.s32 0, %v128_v3  ;;  %v1405_v10 = vsub.s32 1, %v128_v3 }
   0x5   :  { %36 = vst [vmem:[#allocation2 + $0x10] sm:$0x1] %v1331_v1  ;;  %37 = vst [vmem:[#allocation2 + $0x20] sm:$0x1] %v1331_v1  ;;  %v1417_v12 = vld [vmem:[%s2418_s0 + $0x30] sm:$0xff]  ;;  %v1422_v13 = vld [vmem:[%s2418_s0 + $0x40] sm:$0xff] }
   0x6   :  { %38 = vst [vmem:[#allocation2 + $0x30] sm:$0x1] %v1331_v1  ;;  %39 = vst [vmem:[#allocation2 + $0x40] sm:$0x1] %v1331_v1  ;;  %v1430_v14 = vld [vmem:[%s2418_s0 + $0x48] sm:$0xff]  ;;  %v1435_v15 = vld [vmem:[%s2418_s0 + $0x50] sm:$0xff]  ;;  %v1443_v17 = vrot.slane %v108_v6, %v1405_v10  ;;  %v1479_v24 = vrot.slane %v108_v6, %v1403_v9 }
   0x7   :  { %40 = vst [vmem:[#allocation2 + $0x50] sm:$0x1] %v1331_v1  ;;  %41 = vst [vmem:[#allocation2 + $0x60] sm:$0x1] %v1331_v1  ;;  %v1440_v16 = vld [vmem:[%s2418_s0 + $0x58] sm:$0xff]  ;;  %v1451_v18 = vld [vmem:[%s2418_s0 + $0x60] sm:$0xff] }
   0x8   :  { %42 = vst [vmem:[#allocation2 + $0x70] sm:$0x1] %v1331_v1  ;;  %43 = vst [vmem:[#allocation2 + $0x80] sm:$0x1] %v1331_v1  ;;  %v1456_v19 = vld [vmem:[%s2418_s0 + $0x38] sm:$0xff]  ;;  %v1461_v20 = vld [vmem:[%s2418_s0 + $0x68] sm:$0xff]  ;;  %v169_v27 = vmul.f32 %v1443_v17, %v1381_v4  ;;  %v170_v28 = vmul.f32 %v1443_v17, %v1386_v5  ;;  %v171_v39 = vmul.f32 %v1443_v17, %v1396_v7 }
   0x9   :  { %46 = vst [vmem:[#allocation2 + $0xb0] sm:$0x1] %v1331_v1  ;;  %47 = vst [vmem:[#allocation2 + $0xc0] sm:$0x1] %v1331_v1  ;;  %v1463_v21 = vsub.s32 2, %v128_v3  ;;  %v1471_v22 = vld [vmem:[%s2418_s0 + $0x70] sm:$0xff]  ;;  %v172_v53 = vmul.f32 %v1443_v17, %v1401_v8 }
   0xa   :  { %48 = vst [vmem:[#allocation2 + $0xd0] sm:$0x1] %v1331_v1  ;;  %49 = vst [vmem:[#allocation2 + $0xe0] sm:$0x1] %v1331_v1  ;;  %v1476_v23 = vld [vmem:[%s2418_s0 + $0x78] sm:$0xff]  ;;  %v155_v26 = vld [vmem:[#allocation2 + $0xa1] sm:$0xff] }
   0xb   :  { %50 = vst [vmem:[#allocation2 + $0xf0] sm:$0x1] %v1331_v1  ;;  %51 = vst [vmem:[#allocation2 + $0x100] sm:$0x1] %v1331_v1  ;;  %v109_v25 = vld [vmem:[%s2417_s1 + $0x4] sm:$0x7]  ;;  %v1491_v29 = vrot.slane %v108_v6, %v1463_v21  ;;  %v175_v51 = vmul.f32 %v1443_v17, %v155_v26 }
   0xc   :  { %52 = vst [vmem:[#allocation2 + $0x110] sm:$0x1] %v1331_v1  ;;  %53 = vst [vmem:[#allocation2 + $0x120] sm:$0x1] %v1331_v1  ;;  %v1504_v36 = vrot.slane %v109_v25, %v1403_v9  ;;  %v1511_v40 = vrot.slane %v109_v25, %v1405_v10  ;;  %v1539_v63 = vrot.slane %v109_v25, %v1463_v21  ;;  %v1546_v6 = vld [vmem:[%s2417_s1 + $0x8] sm:$0x7] }
   0xd   :  { %56 = vst [vmem:[#allocation2 + $0x19] sm:$0x1] %v1331_v1  ;;  %57 = vst [vmem:[#allocation2 + $0x29] sm:$0x1] %v1331_v1 }
   0xe   :  { %58 = vst [vmem:[#allocation2 + $0x39] sm:$0x1] %v1331_v1  ;;  %59 = vst [vmem:[#allocation2 + $0x49] sm:$0x1] %v1331_v1  ;;  %v325_v59 = vmul.f32 %v1511_v40, %v1386_v5  ;;  %v326_v0 = vmul.f32 %v1511_v40, %v1396_v7 }
   0xf   :  { %60 = vst [vmem:[#allocation2 + $0x59] sm:$0x1] %v1331_v1  ;;  %61 = vst [vmem:[#allocation2 + $0x69] sm:$0x1] %v1331_v1 }
  0x10   :  { %62 = vst [vmem:[#allocation2 + $0x79] sm:$0x1] %v1331_v1  ;;  %63 = vst [vmem:[#allocation2 + $0x89] sm:$0x1] %v1331_v1 }
  0x11   :  { %66 = vst [vmem:[#allocation2 + $0xb9] sm:$0x1] %v1331_v1  ;;  %67 = vst [vmem:[#allocation2 + $0xc9] sm:$0x1] %v1331_v1 }
  0x12   :  { %68 = vst [vmem:[#allocation2 + $0xd9] sm:$0x1] %v1331_v1  ;;  %69 = vst [vmem:[#allocation2 + $0xe9] sm:$0x1] %v1331_v1 }
  0x13   :  { %70 = vst [vmem:[#allocation2 + $0xf9] sm:$0x1] %v1331_v1  ;;  %71 = vst [vmem:[#allocation2 + $0x109] sm:$0x1] %v1331_v1 }
  0x14   :  { %72 = vst [vmem:[#allocation2 + $0x119] sm:$0x1] %v1331_v1  ;;  %73 = vst [vmem:[#allocation2 + $0x129] sm:$0x1] %v1331_v1 }
  0x15   :  { %35 = vst [vmem:[#allocation2] sm:$0x1] %v1331_v1  ;;  %44 = vst [vmem:[#allocation2 + $0x90] sm:$0x1] %v1331_v1 }
  0x16   :  { %45 = vst [vmem:[#allocation2 + $0xa0] sm:$0x1] %v1331_v1  ;;  %54 = vst [vmem:[#allocation2 + $0x130] sm:$0x1] %v1331_v1 }
  0x17   :  { %55 = vst [vmem:[#allocation2 + $0x9] sm:$0x1] %v1331_v1  ;;  %64 = vst [vmem:[#allocation2 + $0x99] sm:$0x1] %v1331_v1 }
  0x18   :  { %65 = vst [vmem:[#allocation2 + $0xa9] sm:$0x1] %v1331_v1  ;;  %74 = vst [vmem:[#allocation2 + $0x139] sm:$0x1] %v1331_v1 }
  0x19   :  { %92 = vst [vmem:[#allocation2 + $0x11] sm:$0xff] %v1375_v2  ;;  %93 = vst [vmem:[#allocation2 + $0x21] sm:$0xff] %v1381_v4 }
  0x1a   :  { %94 = vst [vmem:[#allocation2 + $0x31] sm:$0xff] %v1386_v5  ;;  %2446 = vst [vmem:[#allocation3_spill] sm:$0xff] %v1405_v10 }
  0x1b   :  { %95 = vst [vmem:[#allocation2 + $0x41] sm:$0xff] %v1396_v7  ;;  %96 = vst [vmem:[#allocation2 + $0x51] sm:$0xff] %v1401_v8 }
  0x1c   :  { %97 = vst [vmem:[#allocation2 + $0x61] sm:$0xff] %v1412_v11  ;;  %98 = vst [vmem:[#allocation2 + $0x71] sm:$0xff] %v1417_v12 }
  0x1d   :  { %100 = vst [vmem:[#allocation2 + $0xb1] sm:$0xff] %v1422_v13  ;;  %101 = vst [vmem:[#allocation2 + $0xc1] sm:$0xff] %v1430_v14  ;;  %v119_v33 = vld [vmem:[#allocation2 + $0xa0] sm:$0xff] }
  0x1e   :  { %102 = vst [vmem:[#allocation2 + $0xd1] sm:$0xff] %v1435_v15  ;;  %103 = vst [vmem:[#allocation2 + $0xe1] sm:$0xff] %v1440_v16  ;;  %v139_v50 = vmul.f32 %v1479_v24, %v119_v33 }
  0x1f   :  { %104 = vst [vmem:[#allocation2 + $0xf1] sm:$0xff] %v1451_v18  ;;  %99 = vst [vmem:[#allocation2 + $0x81] sm:$0xff] %v1456_v19  ;;  %v207_v49 = vld [vmem:[#allocation2 + $0xa2] sm:$0xff] }
  0x20   :  { %105 = vst [vmem:[#allocation2 + $0x101] sm:$0xff] %v1461_v20  ;;  %106 = vst [vmem:[#allocation2 + $0x111] sm:$0xff] %v1471_v22  ;;  %v1493_v30 = vld [vmem:[#allocation2 + $0x20] sm:$0xff]  ;;  %v227_v62 = vmul.f32 %v1491_v29, %v207_v49  ;;  %v191_v3 = vadd.f32 %v175_v51, %v139_v50 }
  0x21   :  { %107 = vst [vmem:[#allocation2 + $0x121] sm:$0xff] %v1476_v23  ;;  %v1495_v31 = vld [vmem:[#allocation2 + $0x22] sm:$0xff]  ;;  %v1497_v32 = vld [vmem:[#allocation2 + $0x30] sm:$0xff]  ;;  %v133_v34 = vmul.f32 %v1479_v24, %v1493_v30 }
  0x22   :  { %v134_v35 = vmul.f32 %v1479_v24, %v1497_v32  ;;  %v1506_v37 = vld [vmem:[#allocation2 + $0x32] sm:$0xff]  ;;  %v115_v38 = vld [vmem:[#allocation2 + $0x40] sm:$0xff]  ;;  %v221_v41 = vmul.f32 %v1491_v29, %v1495_v31  ;;  %v273_v47 = vmul.f32 %v1504_v36, %v1497_v32 }
  0x23   :  { %2447 = vst [vmem:[#allocation4_spill] sm:$0xff] %v1506_v37  ;;  %v135_v42 = vmul.f32 %v1479_v24, %v115_v38  ;;  %v1516_v43 = vld [vmem:[#allocation2 + $0x42] sm:$0xff]  ;;  %v1518_v44 = vld [vmem:[#allocation2 + $0x50] sm:$0xff]  ;;  %v185_v45 = vadd.f32 %v169_v27, %v133_v34  ;;  %v222_v48 = vmul.f32 %v1491_v29, %v1506_v37  ;;  %v274_v55 = vmul.f32 %v1504_v36, %v115_v38 }
  0x24   :  { %v186_v46 = vadd.f32 %v170_v28, %v134_v35  ;;  %v136_v52 = vmul.f32 %v1479_v24, %v1518_v44  ;;  %v223_v57 = vmul.f32 %v1491_v29, %v1516_v43  ;;  %v117_v58 = vld [vmem:[#allocation2 + $0x60] sm:$0xff]  ;;  %v1535_v60 = vld [vmem:[#allocation2 + $0x52] sm:$0xff]  ;;  %v173_v27 = vmul.f32 %v1443_v17, %v1412_v11 }
  0x25   :  { %v187_v54 = vadd.f32 %v171_v39, %v135_v42  ;;  %v237_v56 = vadd.f32 %v221_v41, %v185_v45  ;;  %v137_v5 = vmul.f32 %v1479_v24, %v117_v58  ;;  %v275_v25 = vmul.f32 %v1504_v36, %v1518_v44  ;;  %v1553_v28 = vld [vmem:[#allocation2 + $0x62] sm:$0xff]  ;;  %v120_v51 = vld [vmem:[#allocation2 + $0xb0] sm:$0xff] }
  0x26   :  { %v238_v61 = vadd.f32 %v222_v48, %v186_v46  ;;  %v188_v26 = vadd.f32 %v172_v53, %v136_v52  ;;  %v224_v33 = vmul.f32 %v1491_v29, %v1535_v60  ;;  %v1559_v41 = vrot.slane %v1546_v6, %v1403_v9 }
  0x27   :  { %v289_v1 = vadd.f32 %v273_v47, %v237_v56  ;;  %v239_v34 = vadd.f32 %v223_v57, %v187_v54  ;;  %v1563_v42 = vrot.slane %v1546_v6, %v1405_v10  ;;  %v377_v45 = vmul.f32 %v1539_v63, %v1506_v37 }
  0x28   :  { %v290_v35 = vadd.f32 %v274_v55, %v238_v61  ;;  %v327_v46 = vmul.f32 %v1511_v40, %v1401_v8  ;;  %v189_v47 = vadd.f32 %v173_v27, %v137_v5  ;;  %v276_v48 = vmul.f32 %v1504_v36, %v117_v58  ;;  %v1579_v61 = vld [vmem:[#allocation2 + $0x70] sm:$0xff] }
  0x29   :  { %v341_v39 = vadd.f32 %v325_v59, %v289_v1  ;;  %v225_v49 = vmul.f32 %v1491_v29, %v1553_v28  ;;  %v240_v50 = vadd.f32 %v224_v33, %v188_v26  ;;  %v243_v52 = vadd.f32 %v227_v62, %v191_v3 }
  0x2a   :  { %v482_v53 = vmul.f32 %v1563_v42, %v1396_v7  ;;  %v291_v54 = vadd.f32 %v275_v25, %v239_v34  ;;  %v342_v55 = vadd.f32 %v326_v0, %v290_v35  ;;  %v430_v56 = vmul.f32 %v1559_v41, %v115_v38  ;;  %v121_v25 = vld [vmem:[#allocation2 + $0xc0] sm:$0xff]  ;;  %v208_v34 = vld [vmem:[#allocation2 + $0xb2] sm:$0xff] }
  0x2b   :  { %v378_v57 = vmul.f32 %v1539_v63, %v1516_v43  ;;  %v328_v59 = vmul.f32 %v1511_v40, %v1412_v11  ;;  %v393_v1 = vadd.f32 %v377_v45, %v341_v39  ;;  %v277_v26 = vmul.f32 %v1504_v36, %v1579_v61 }
  0x2c   :  { %v140_v62 = vmul.f32 %v1479_v24, %v120_v51  ;;  %v176_v7 = vmul.f32 %v1443_v17, %v1422_v13  ;;  %v279_v0 = vmul.f32 %v1504_v36, %v120_v51  ;;  %v331_v38 = vmul.f32 %v1511_v40, %v1422_v13 }
  0x2d   :  { %v241_v3 = vadd.f32 %v225_v49, %v189_v47  ;;  %v292_v5 = vadd.f32 %v276_v48, %v240_v50  ;;  %v343_v27 = vadd.f32 %v327_v46, %v291_v54  ;;  %v379_v33 = vmul.f32 %v1539_v63, %v1535_v60 }
  0x2e   :  { %v295_v35 = vadd.f32 %v279_v0, %v243_v52  ;;  %v394_v39 = vadd.f32 %v378_v57, %v342_v55  ;;  %v446_v45 = vadd.f32 %v430_v56, %v393_v1  ;;  %v431_v37 = vmul.f32 %v1559_v41, %v1518_v44  ;;  %v1604_v55 = vld [vmem:[#allocation2 + $0xc2] sm:$0xff] }
  0x2f   :  { %v483_v51 = vmul.f32 %v1563_v42, %v1401_v8  ;;  %v432_v10 = vmul.f32 %v1559_v41, %v117_v58  ;;  %v329_v13 = vmul.f32 %v1511_v40, %v1417_v12  ;;  %v380_v46 = vmul.f32 %v1539_v63, %v1553_v28  ;;  %v122_v8 = vld [vmem:[#allocation2 + $0xd0] sm:$0xff] }
  0x30   :  { %v192_v47 = vadd.f32 %v176_v7, %v140_v62  ;;  %v141_v48 = vmul.f32 %v1479_v24, %v121_v25  ;;  %v177_v49 = vmul.f32 %v1443_v17, %v1430_v14  ;;  %v228_v50 = vmul.f32 %v1491_v29, %v208_v34 }
  0x31   :  { %v293_v44 = vadd.f32 %v277_v26, %v241_v3  ;;  %v344_v52 = vadd.f32 %v328_v59, %v292_v5  ;;  %v347_v54 = vadd.f32 %v331_v38, %v295_v35  ;;  %v383_v58 = vmul.f32 %v1539_v63, %v208_v34  ;;  %v1618_v5 = vld [vmem:[#allocation2 + $0xd2] sm:$0xff] }
  0x32   :  { %v395_v56 = vadd.f32 %v379_v33, %v343_v27  ;;  %v447_v57 = vadd.f32 %v431_v37, %v394_v39  ;;  %v1607_v1 = vadd.f32 %v482_v53, %v446_v45  ;;  %v484_v62 = vmul.f32 %v1563_v42, %v1412_v11 }
  0x33   :  { %v433_v7 = vmul.f32 %v1559_v41, %v1579_v61  ;;  %v280_v0 = vmul.f32 %v1504_v36, %v121_v25  ;;  %v436_v59 = vmul.f32 %v1559_v41, %v121_v25  ;;  %v142_v26 = vmul.f32 %v1479_v24, %v122_v8 }
  0x34   :  { %v178_v38 = vmul.f32 %v1443_v17, %v1435_v15  ;;  %v193_v3 = vadd.f32 %v177_v49, %v141_v48  ;;  %v229_v37 = vmul.f32 %v1491_v29, %v1604_v55  ;;  %v244_v53 = vadd.f32 %v228_v50, %v192_v47 }
  0x35   :  { %v1622_v11 = vadd.f32 %v329_v13, %v293_v44  ;;  %v396_v27 = vadd.f32 %v380_v46, %v344_v52  ;;  %v399_v33 = vadd.f32 %v383_v58, %v347_v54  ;;  %v448_v34 = vadd.f32 %v432_v10, %v395_v56  ;;  %v123_v46 = vld [vmem:[#allocation2 + $0xe0] sm:$0xff] }
  0x36   :  { %v1624_v35 = vadd.f32 %v483_v51, %v447_v57  ;;  %v485_v25 = vmul.f32 %v1563_v42, %v1417_v12  ;;  %v332_v39 = vmul.f32 %v1511_v40, %v1430_v14  ;;  %v488_v45 = vmul.f32 %v1563_v42, %v1430_v14 }
  0x37   :  { %v194_v48 = vadd.f32 %v178_v38, %v142_v26  ;;  %v281_v49 = vmul.f32 %v1504_v36, %v122_v8  ;;  %v230_v13 = vmul.f32 %v1491_v29, %v1618_v5  ;;  %v333_v10 = vmul.f32 %v1511_v40, %v1435_v15 }
  0x38   :  { %v384_v51 = vmul.f32 %v1539_v63, %v1604_v55  ;;  %v245_v47 = vadd.f32 %v229_v37, %v193_v3  ;;  %v296_v50 = vadd.f32 %v280_v0, %v244_v53  ;;  %v282_v44 = vmul.f32 %v1504_v36, %v123_v46 }
  0x39   :  { %v449_v52 = vadd.f32 %v433_v7, %v396_v27  ;;  %v452_v54 = vadd.f32 %v436_v59, %v399_v33  ;;  %v1640_v14 = vadd.f32 %v484_v62, %v448_v34  ;;  %v437_v58 = vmul.f32 %v1559_v41, %v122_v8  ;;  %v1657_v59 = vld [vmem:[#allocation2 + $0xe2] sm:$0xff] }
  0x3a   :  { %v489_v56 = vmul.f32 %v1563_v42, %v1435_v15  ;;  %v334_v57 = vmul.f32 %v1511_v40, %v1440_v16  ;;  %v385_v26 = vmul.f32 %v1539_v63, %v1618_v5  ;;  %v246_v38 = vadd.f32 %v230_v13, %v194_v48 }
  0x3b   :  { %v297_v3 = vadd.f32 %v281_v49, %v245_v47  ;;  %v348_v0 = vadd.f32 %v332_v39, %v296_v50  ;;  %v143_v37 = vmul.f32 %v1479_v24, %v123_v46  ;;  %v179_v62 = vmul.f32 %v1443_v17, %v1440_v16  ;;  %v124_v50 = vld [vmem:[#allocation2 + $0xf0] sm:$0xff] }
  0x3c   :  { %v1652_v7 = vadd.f32 %v485_v25, %v449_v52  ;;  %v1654_v8 = vadd.f32 %v488_v45, %v452_v54  ;;  %v438_v15 = vmul.f32 %v1559_v41, %v123_v46  ;;  %v298_v53 = vadd.f32 %v282_v44, %v246_v38 }
  0x3d   :  { %v349_v27 = vadd.f32 %v333_v10, %v297_v3  ;;  %v400_v33 = vadd.f32 %v384_v51, %v348_v0  ;;  %v490_v34 = vmul.f32 %v1563_v42, %v1440_v16  ;;  %v195_v13 = vadd.f32 %v179_v62, %v143_v37  ;;  %v206_v16 = vld [vmem:[#allocation2 + $0x72] sm:$0xff] }
  0x3e   :  { %v350_v39 = vadd.f32 %v334_v57, %v298_v53  ;;  %v231_v25 = vmul.f32 %v1491_v29, %v1657_v59  ;;  %v386_v45 = vmul.f32 %v1539_v63, %v1657_v59  ;;  %v138_v46 = vmul.f32 %v1479_v24, %v1579_v61  ;;  %v1684_v37 = vld [vmem:[#allocation2 + $0xf2] sm:$0xff]  ;;  %v258_v53 = vld [vmem:[#allocation2 + $0x80] sm:$0xff] }
  0x3f   :  { %v401_v48 = vadd.f32 %v385_v26, %v349_v27  ;;  %v453_v49 = vadd.f32 %v437_v58, %v400_v33  ;;  %v174_v10 = vmul.f32 %v1443_v17, %v1417_v12  ;;  %v283_v58 = vmul.f32 %v1504_v36, %v124_v50 }
  0x40   :  { %v247_v52 = vadd.f32 %v231_v25, %v195_v13  ;;  %v402_v54 = vadd.f32 %v386_v45, %v350_v39  ;;  %v226_v26 = vmul.f32 %v1491_v29, %v206_v16  ;;  %v381_v38 = vmul.f32 %v1539_v63, %v206_v16  ;;  %v125_v45 = vld [vmem:[#allocation2 + $0x100] sm:$0xff] }
  0x41   :  { %v454_v51 = vadd.f32 %v438_v15, %v401_v48  ;;  %v1669_v47 = vadd.f32 %v489_v56, %v453_v49  ;;  %v190_v57 = vadd.f32 %v174_v10, %v138_v46  ;;  %v144_v61 = vmul.f32 %v1479_v24, %v124_v50 }
  0x42   :  { %v180_v12 = vmul.f32 %v1443_v17, %v1451_v18  ;;  %v335_v56 = vmul.f32 %v1511_v40, %v1451_v18  ;;  %v439_v3 = vmul.f32 %v1559_v41, %v124_v50  ;;  %v491_v0 = vmul.f32 %v1563_v42, %v1451_v18 }
  0x43   :  { %v1671_v44 = vadd.f32 %v490_v34, %v454_v51  ;;  %v299_v62 = vadd.f32 %v283_v58, %v247_v52  ;;  %v242_v27 = vadd.f32 %v226_v26, %v190_v57  ;;  %v397_v33 = vadd.f32 %v381_v38, %v1622_v11 }
  0x44   :  { %v455_v15 = vadd.f32 %v439_v3, %v402_v54  ;;  %v196_v34 = vadd.f32 %v180_v12, %v144_v61  ;;  %v232_v39 = vmul.f32 %v1491_v29, %v1684_v37  ;;  %v278_v13 = vmul.f32 %v1504_v36, %v258_v53 }
  0x45   :  { %v351_v48 = vadd.f32 %v335_v56, %v299_v62  ;;  %v330_v18 = vmul.f32 %v1511_v40, %v1456_v19  ;;  %v434_v25 = vmul.f32 %v1559_v41, %v258_v53  ;;  %v387_v46 = vmul.f32 %v1539_v63, %v1684_v37  ;;  %v362_v62 = vld [vmem:[#allocation2 + $0x82] sm:$0xff]  ;;  %v415_v53 = vld [vmem:[#allocation2 + $0x90] sm:$0xff] }
  0x46   :  { %v1689_v49 = vadd.f32 %v491_v0, %v455_v15  ;;  %v486_v11 = vmul.f32 %v1563_v42, %v1456_v19  ;;  %v294_v10 = vadd.f32 %v278_v13, %v242_v27  ;;  %v248_v50 = vadd.f32 %v232_v39, %v196_v34  ;;  %v467_v27 = vld [vmem:[#allocation2 + $0x91] sm:$0xff]  ;;  %v1722_v39 = vld [vmem:[%s2419_s2] ss:$0 sm:$0xff] }
  0x47   :  { %v450_v51 = vadd.f32 %v434_v25, %v397_v33  ;;  %v284_v52 = vmul.f32 %v1504_v36, %v125_v45  ;;  %v403_v57 = vadd.f32 %v387_v46, %v351_v48  ;;  %v336_v26 = vmul.f32 %v1511_v40, %v1461_v20  ;;  %v423_v48 = vld [vmem:[#allocation2 + $0x130] sm:$0xff]  ;;  %v1732_v46 = vld [vmem:[#allocation2] sm:$0xff] }
  0x48   :  { %v346_v54 = vadd.f32 %v330_v18, %v294_v10  ;;  %v440_v38 = vmul.f32 %v1559_v41, %v125_v45  ;;  %v492_v19 = vmul.f32 %v1563_v42, %v1461_v20  ;;  %v1713_v0 = vrot.slane %v1546_v6, %v1463_v21  ;;  %v519_v13 = vld [vmem:[#allocation2 + $0x92] sm:$0xff] }
  0x49   :  { %v1700_v58 = vadd.f32 %v486_v11, %v450_v51  ;;  %v300_v61 = vadd.f32 %v284_v52, %v248_v50  ;;  %v382_v34 = vmul.f32 %v1539_v63, %v362_v62  ;;  %v435_v25 = vmul.f32 %v1559_v41, %v415_v53  ;;  %v112_v11 = vld [vmem:[#allocation2 + $0x10] sm:$0xff]  ;;  %v1738_v52 = vld [vmem:[#allocation2 + $0x1] sm:$0xff] }
  0x4a   :  { %v456_v56 = vadd.f32 %v440_v38, %v403_v57  ;;  %v534_v15 = vmul.f32 %v1713_v0, %v1516_v43  ;;  %v535_v6 = vmul.f32 %v1713_v0, %v1535_v60  ;;  %v536_v18 = vmul.f32 %v1713_v0, %v1553_v28 }
  0x4b   :  { %v1705_v12 = vadd.f32 %v336_v26, %v300_v61  ;;  %v537_v43 = vmul.f32 %v1713_v0, %v206_v16  ;;  %v487_v10 = vmul.f32 %v1563_v42, %v467_v27  ;;  %v1741_v28 = vmul.f32 %v1559_v41, %v423_v48  ;;  %v1777_v27 = vld [vmem:[#allocation2 + $0x102] sm:$0xff] }
  0x4c   :  { %v1709_v3 = vadd.f32 %v492_v19, %v456_v56  ;;  %v550_v33 = vadd.f32 %v534_v15, %v1607_v1  ;;  %v540_v1 = vmul.f32 %v1713_v0, %v1604_v55  ;;  %v551_v51 = vadd.f32 %v535_v6, %v1624_v35  ;;  %v200_v19 = vld [vmem:[#allocation2 + $0x12] sm:$0xff] }
  0x4d   :  { %v552_v50 = vadd.f32 %v536_v18, %v1640_v14  ;;  %v553_v60 = vadd.f32 %v537_v43, %v1652_v7  ;;  %v539_v16 = vmul.f32 %v1713_v0, %v519_v13  ;;  %v398_v57 = vadd.f32 %v382_v34, %v346_v54  ;;  %v1753_v14 = vld [vmem:[#allocation2 + $0x110] sm:$0xff] }
  0x4e   :  { %v1745_v55 = vadd.f32 %v1722_v39, %v550_v33  ;;  %v541_v26 = vmul.f32 %v1713_v0, %v1618_v5  ;;  %v1751_v35 = vmul.f32 %v1713_v0, %v1657_v59  ;;  %v131_v7 = vmul.f32 %v1479_v24, %v1732_v46  ;;  %v1766_v59 = vld [vmem:[#allocation2 + $0x2] sm:$0xff]  ;;  %v1788_v13 = vld [vmem:[#allocation2 + $0x112] sm:$0xff] }
  0x4f   :  { %v132_v38 = vmul.f32 %v1479_v24, %v112_v11  ;;  %v1759_v61 = vadd.f32 %v540_v1, %v1654_v8  ;;  %v145_v56 = vmul.f32 %v1479_v24, %v125_v45  ;;  %v181_v54 = vmul.f32 %v1443_v17, %v1461_v20 }
  0x50   :  { %v167_v5 = vmul.f32 %v1443_v17, %v1738_v52  ;;  %v1769_v15 = vadd.f32 %v1722_v39, %v551_v51  ;;  %v1772_v53 = vadd.f32 %v1722_v39, %v552_v50  ;;  %v1775_v8 = vadd.f32 %v1722_v39, %v553_v60 }
  0x51   :  { %v168_v20 = vmul.f32 %v1443_v17, %v1375_v2  ;;  %v1782_v45 = vmul.f32 0.70710677, %v1745_v55  ;;  %v451_v33 = vadd.f32 %v435_v25, %v398_v57  ;;  %v146_v34 = vmul.f32 %v1479_v24, %v1753_v14 }
  0x52   :  { %v182_v48 = vmul.f32 %v1443_v17, %v1471_v22  ;;  %v183_v6 = vadd.f32 %v167_v5, %v131_v7  ;;  %v219_v43 = vmul.f32 %v1491_v29, %v1766_v59  ;;  %v220_v1 = vmul.f32 %v1491_v29, %v200_v19 }
  0x53   :  { %v184_v18 = vadd.f32 %v168_v20, %v132_v38  ;;  %v538_v51 = vmul.f32 %v1713_v0, %v362_v62  ;;  %v197_v50 = vadd.f32 %v181_v54, %v145_v56  ;;  %v233_v25 = vmul.f32 %v1491_v29, %v1777_v27  ;;  %v266_v54 = vld [vmem:[#allocation2 + $0x120] sm:$0xff] }
  0x54   :  { %v271_v24 = vmul.f32 %v1504_v36, %v112_v11  ;;  %v235_v60 = vadd.f32 %v219_v43, %v183_v6  ;;  %v272_v17 = vmul.f32 %v1504_v36, %v1493_v30  ;;  %v323_v7 = vmul.f32 %v1511_v40, %v1375_v2 }
  0x55   :  { %v236_v57 = vadd.f32 %v220_v1, %v184_v18  ;;  %v503_v38 = vadd.f32 %v487_v10, %v451_v33  ;;  %v198_v5 = vadd.f32 %v182_v48, %v146_v34  ;;  %v234_v20 = vmul.f32 %v1491_v29, %v1788_v13  ;;  %v408_v33 = vld [vmem:[#allocation2 + $0x20] sm:$0xff] }
  0x56   :  { %v324_v62 = vmul.f32 %v1511_v40, %v1381_v4  ;;  %v606_v56 = vmul.f32 0.70710677, %v1769_v15  ;;  %v1807_v11 = vmul.f32 0.70710677, %v1772_v53  ;;  %v287_v6 = vadd.f32 %v271_v24, %v235_v60  ;;  %v460_v60 = vld [vmem:[#allocation2 + $0x21] sm:$0xff] }
  0x57   :  { %v288_v18 = vadd.f32 %v272_v17, %v236_v57  ;;  %v1810_v30 = vadd.f32 %v541_v26, %v1669_v47  ;;  %v1813_v2 = vmul.f32 0.70710677, %v1775_v8  ;;  %v249_v10 = vadd.f32 %v233_v25, %v197_v50  ;;  %v461_v57 = vld [vmem:[#allocation2 + $0x31] sm:$0xff] }
  0x58   :  { %v285_v29 = vmul.f32 %v1504_v36, %v1753_v14  ;;  %v339_v4 = vadd.f32 %v323_v7, %v287_v6  ;;  %v375_v48 = vmul.f32 %v1539_v63, %v200_v19  ;;  %v376_v43 = vmul.f32 %v1539_v63, %v1495_v31  ;;  %v796_v31 = vld [vmem:[%s2420_s5] sm:$0x7] }
  0x59   :  { %v340_v34 = vadd.f32 %v324_v62, %v288_v18  ;;  %v554_v1 = vadd.f32 %v538_v51, %v1700_v58  ;;  %v555_v24 = vadd.f32 %v539_v16, %v503_v38  ;;  %v250_v47 = vadd.f32 %v234_v20, %v198_v5  ;;  %v512_v62 = vld [vmem:[#allocation2 + $0x22] sm:$0xff] }
  0x5a   :  { %v286_v26 = vmul.f32 %v1504_v36, %v266_v54  ;;  %v391_v50 = vadd.f32 %v375_v48, %v339_v4  ;;  %v428_v17 = vmul.f32 %v1559_v41, %v408_v33  ;;  %v429_v7 = vmul.f32 %v1559_v41, %v1497_v32  ;;  %v2448_v33 = vld [vmem:[#allocation3_spill] sm:$0xff]  ;;  %v2449_v48 = vld [vmem:[#allocation4_spill] sm:$0xff] }
  0x5b   :  { %v392_v25 = vadd.f32 %v376_v43, %v340_v34  ;;  %v388_v58 = vmul.f32 %v1539_v63, %v1777_v27  ;;  %v301_v16 = vadd.f32 %v285_v29, %v249_v10  ;;  %v337_v36 = vmul.f32 %v1511_v40, %v1471_v22  ;;  %v370_v29 = vld [vmem:[#allocation2 + $0x122] sm:$0xff] }
  0x5c   :  { %v338_v19 = vmul.f32 %v1511_v40, %v1476_v23  ;;  %v444_v51 = vadd.f32 %v428_v17, %v391_v50  ;;  %v480_v5 = vmul.f32 %v1563_v42, %v460_v60  ;;  %v481_v32 = vmul.f32 %v1563_v42, %v461_v57 }
  0x5d   :  { %v445_v38 = vadd.f32 %v429_v7, %v392_v25  ;;  %v302_v20 = vadd.f32 %v286_v26, %v250_v47  ;;  %v532_v6 = vmul.f32 %v1713_v0, %v512_v62  ;;  %v1838_v18 = vrot.slane %v796_v31, %v1403_v9 }
  0x5e   :  { %v1841_v10 = vrot.slane %v796_v31, %v2448_v33  ;;  %v496_v4 = vadd.f32 %v480_v5, %v444_v51  ;;  %v533_v40 = vmul.f32 %v1713_v0, %v2449_v48  ;;  %v1846_v43 = vrot.slane %v796_v31, %v1463_v21 }
  0x5f   :  { %v497_v34 = vadd.f32 %v481_v32, %v445_v38  ;;  %v353_v60 = vadd.f32 %v337_v36, %v301_v16  ;;  %v389_v47 = vmul.f32 %v1539_v63, %v1788_v13  ;;  %v819_v26 = vmul.f32 %v1838_v18, %v1732_v46 }
  0x60   :  { %v855_v57 = vmul.f32 %v1841_v10, %v1738_v52  ;;  %v404_v50 = vadd.f32 %v388_v58, %v1705_v12  ;;  %v441_v25 = vmul.f32 %v1559_v41, %v1753_v14  ;;  %v548_v17 = vadd.f32 %v532_v6, %v496_v4 }
  0x61   :  { %v549_v7 = vadd.f32 %v533_v40, %v497_v34  ;;  %v354_v62 = vadd.f32 %v338_v19, %v302_v20  ;;  %v390_v31 = vmul.f32 %v1539_v63, %v370_v29  ;;  %v907_v36 = vmul.f32 %v1846_v43, %v1766_v59 }
  0x62   :  { %v871_v16 = vadd.f32 %v855_v57, %v819_v26  ;;  %1297 = verf.f32 %v1782_v45  ;;  %v1862_v46 = vadd.f32 %v1722_v39, %v554_v1  ;;  %v571_v52 = vadd.f32 %v1722_v39, %v548_v17  ;;  %v475_v1 = vld [vmem:[#allocation2 + $0x131] sm:$0xff] }
  0x63   :  { %v1866_v12 = vadd.f32 %v1722_v39, %v549_v7  ;;  %1299 = verf.f32 %v606_v56  ;;  %v405_v14 = vadd.f32 %v389_v47, %v353_v60  ;;  %v442_v58 = vmul.f32 %v1559_v41, %v266_v54 }
  0x64   :  { %v1869_v19 = vadd.f32 %v907_v36, %v871_v16  ;;  %1301 = verf.f32 %v1807_v11  ;;  %v543_v63 = vmul.f32 %v1713_v0, %v1684_v37  ;;  %v603_v59 = vmul.f32 0.70710677, %v571_v52 }
  0x65   :  { %v604_v45 = vmul.f32 0.70710677, %v1866_v12  ;;  %v1876_v51 = vadd.f32 %v1722_v39, %v555_v24  ;;  %v457_v38 = vadd.f32 %v441_v25, %v404_v50  ;;  %v493_v56 = vmul.f32 %v1563_v42, %v1471_v22 }
  0x66   :  { %v406_v5 = vadd.f32 %v390_v31, %v354_v62  ;;  %v558_v41 = vadd.f32 %v1751_v35, %v1671_v44  ;;  %v1884_v11 = vadd.f32 %v1722_v39, %v1759_v61  ;;  %v609_v37 = vmul.f32 0.70710677, %v1862_v46 }
  0x67   :  { %1303 = verf.f32 %v603_v59  ;;  %v544_v54 = vmul.f32 %v1713_v0, %v1777_v27  ;;  %v458_v24 = vadd.f32 %v442_v58, %v405_v14  ;;  %v494_v32 = vmul.f32 %v1563_v42, %v1476_v23  ;;  %v527_v23 = vld [vmem:[#allocation2 + $0x132] sm:$0xff] }
  0x68   :  { %1305 = verf.f32 %v604_v45  ;;  %v495_v22 = vmul.f32 %v1563_v42, %v475_v1  ;;  %v1894_v44 = vadd.f32 %v1722_v39, %v1810_v30  ;;  %v559_v35 = vadd.f32 %v543_v63, %v1689_v49 }
  0x69   :  { %1307 = verf.f32 %v1813_v2  ;;  %v610_v61 = vmul.f32 0.70710677, %v1876_v51  ;;  %v509_v20 = vadd.f32 %v493_v56, %v457_v38  ;;  %v545_v27 = vmul.f32 %v1713_v0, %v1788_v13 }
  0x6a   :  { %v459_v6 = vadd.f32 %v1741_v28, %v406_v5  ;;  %v1903_v4 = vadd.f32 %v1722_v39, %v558_v41  ;;  %v611_v42 = vmul.f32 0.70710677, %v1884_v11  ;;  %1309 = verf.f32 %v609_v37 }
  0x6b   :  { %v560_v30 = vadd.f32 %v544_v54, %v1709_v3  ;;  %v510_v2 = vadd.f32 %v494_v32, %v458_v24  ;;  %v546_v49 = vmul.f32 %v1713_v0, %v370_v29  ;;  %v612_v48 = vmul.f32 0.70710677, %v1894_v44 }
  0x6c   :  { %v1298_v34 = vpop.eup %1297  ;;  %v1910_v40 = vadd.f32 %v1722_v39, %v559_v35  ;;  %v547_v28 = vmul.f32 %v1713_v0, %v527_v23  ;;  %1311 = verf.f32 %v610_v61  ;;  %v561_v60 = vadd.f32 %v545_v27, %v509_v20 }
  0x6d   :  { %v1300_v13 = vpop.eup %1299  ;;  %v511_v47 = vadd.f32 %v495_v22, %v459_v6  ;;  %v613_v57 = vmul.f32 0.70710677, %v1903_v4  ;;  %1313 = verf.f32 %v611_v42  ;;  %v589_v3 = vmul.f32 0.5, %v1745_v55 }
  0x6e   :  { %v1302_v26 = vpop.eup %1301  ;;  %v1916_v29 = vadd.f32 %v1722_v39, %v560_v30  ;;  %v562_v50 = vadd.f32 %v546_v49, %v510_v2  ;;  %v590_v17 = vmul.f32 0.5, %v1769_v15  ;;  %1315 = verf.f32 %v612_v48 }
  0x6f   :  { %v637_v7 = vadd.f32 1.0, %v1298_v34  ;;  %v614_v0 = vmul.f32 0.70710677, %v1910_v40  ;;  %v1921_v31 = vadd.f32 %v1722_v39, %v561_v60  ;;  %v563_v16 = vadd.f32 %v547_v28, %v511_v47 }
  0x70   :  { %v587_v36 = vmul.f32 0.5, %v571_v52  ;;  %1317 = verf.f32 %v613_v57  ;;  %v638_v55 = vadd.f32 1.0, %v1300_v13  ;;  %v588_v63 = vmul.f32 0.5, %v1866_v12 }
  0x71   :  { %v1304_v25 = vpop.eup %1303  ;;  %v639_v45 = vadd.f32 1.0, %v1302_v26  ;;  %v615_v15 = vmul.f32 0.70710677, %v1916_v29  ;;  %v1926_v1 = vadd.f32 %v1722_v39, %v562_v50  ;;  %v591_v56 = vmul.f32 0.5, %v1772_v53 }
  0x72   :  { %v1306_v62 = vpop.eup %1305  ;;  %v635_v14 = vadd.f32 1.0, %v1304_v25  ;;  %v1931_v5 = vmul.f32 %v637_v7, %v589_v3  ;;  %1319 = verf.f32 %v614_v0  ;;  %v616_v12 = vmul.f32 0.70710677, %v1921_v31 }
  0x73   :  { %v1308_v58 = vpop.eup %1307  ;;  %v636_v59 = vadd.f32 1.0, %v1306_v62  ;;  %v1937_v54 = vadd.f32 %v1722_v39, %v563_v16  ;;  %v1941_v32 = vmul.f32 %v638_v55, %v590_v17  ;;  %v592_v61 = vmul.f32 0.5, %v1775_v8 }
  0x74   :  { %v1928_v38 = vmul.f32 %v635_v14, %v587_v36  ;;  %v1310_v41 = vpop.eup %1309  ;;  %v640_v37 = vadd.f32 1.0, %v1308_v58  ;;  %v1948_v20 = vmul.f32 %v639_v45, %v591_v56  ;;  %1321 = verf.f32 %v615_v15 }
  0x75   :  { %v1933_v52 = vmul.f32 %v636_v59, %v588_v63  ;;  %v617_v39 = vmul.f32 0.70710677, %v1926_v1  ;;  %v641_v6 = vadd.f32 1.0, %v1310_v41  ;;  %v690_v42 = vmul.f32 %v1931_v5, %v1931_v5 }
  0x76   :  { %v688_v24 = vmul.f32 %v1928_v38, %v1928_v38  ;;  %v1312_v35 = vpop.eup %1311  ;;  %v1954_v2 = vmul.f32 %v640_v37, %v592_v61  ;;  %v593_v49 = vmul.f32 0.5, %v1862_v46  ;;  %1323 = verf.f32 %v616_v12 }
  0x77   :  { %v667_v53 = vadd.f32 %v1933_v52, %v1928_v38  ;;  %v689_v22 = vmul.f32 %v1933_v52, %v1933_v52  ;;  %v1314_v27 = vpop.eup %1313  ;;  %v618_v8 = vmul.f32 0.70710677, %v1937_v54  ;;  %v642_v48 = vadd.f32 1.0, %v1312_v35 }
  0x78   :  { %v1316_v34 = vpop.eup %1315  ;;  %v691_v28 = vmul.f32 %v1941_v32, %v1941_v32  ;;  %v643_v47 = vadd.f32 1.0, %v1314_v27  ;;  %v594_v26 = vmul.f32 0.5, %v1876_v51  ;;  %1325 = verf.f32 %v617_v39 }
  0x79   :  { %v668_v23 = vadd.f32 %v667_v53, %v1931_v5  ;;  %v704_v30 = vadd.f32 %v689_v22, %v688_v24  ;;  %v1962_v3 = vmul.f32 %v641_v6, %v593_v49  ;;  %v692_v50 = vmul.f32 %v1948_v20, %v1948_v20 }
  0x7a   :  { %v1318_v57 = vpop.eup %1317  ;;  %v595_v17 = vmul.f32 0.5, %v1884_v11  ;;  %v644_v7 = vadd.f32 1.0, %v1316_v34  ;;  %1327 = verf.f32 %v618_v8  ;;  %v693_v62 = vmul.f32 %v1954_v2, %v1954_v2 }
  0x7b   :  { %v669_v13 = vadd.f32 %v668_v23, %v1941_v32  ;;  %v705_v60 = vadd.f32 %v704_v30, %v690_v42  ;;  %v1970_v16 = vmul.f32 %v642_v48, %v594_v26  ;;  %v596_v14 = vmul.f32 0.5, %v1894_v44 }
  0x7c   :  { %v1320_v0 = vpop.eup %1319  ;;  %v645_v58 = vadd.f32 1.0, %v1318_v57  ;;  %v1974_v55 = vmul.f32 %v643_v47, %v595_v17  ;;  %v694_v63 = vmul.f32 %v1962_v3, %v1962_v3  ;;  %v597_v15 = vmul.f32 0.5, %v1903_v4 }
  0x7d   :  { %v670_v46 = vadd.f32 %v669_v13, %v1948_v20  ;;  %v706_v25 = vadd.f32 %v705_v60, %v691_v28  ;;  %v1980_v56 = vmul.f32 %v644_v7, %v596_v14  ;;  %v646_v41 = vadd.f32 1.0, %v1320_v0 }
  0x7e   :  { %v1322_v45 = vpop.eup %1321  ;;  %v695_v37 = vmul.f32 %v1970_v16, %v1970_v16  ;;  %v1985_v53 = vmul.f32 %v645_v58, %v597_v15  ;;  %v696_v22 = vmul.f32 %v1974_v55, %v1974_v55  ;;  %v598_v35 = vmul.f32 0.5, %v1910_v40 }
  0x7f   :  { %v671_v51 = vadd.f32 %v670_v46, %v1954_v2  ;;  %v707_v36 = vadd.f32 %v706_v25, %v692_v50  ;;  %v599_v61 = vmul.f32 0.5, %v1916_v29  ;;  %v647_v4 = vadd.f32 1.0, %v1322_v45 }
  0x80   :  { %v1324_v24 = vpop.eup %1323  ;;  %v697_v23 = vmul.f32 %v1980_v56, %v1980_v56  ;;  %v1994_v42 = vmul.f32 %v646_v41, %v598_v35  ;;  %v600_v30 = vmul.f32 0.5, %v1921_v31  ;;  %v698_v40 = vmul.f32 %v1985_v53, %v1985_v53 }
  0x81   :  { %v672_v11 = vadd.f32 %v671_v51, %v1962_v3  ;;  %v708_v59 = vadd.f32 %v707_v36, %v693_v62  ;;  %v648_v49 = vadd.f32 1.0, %v1324_v24  ;;  %v601_v29 = vmul.f32 0.5, %v1926_v1 }
  0x82   :  { %v1326_v6 = vpop.eup %1325  ;;  %v2001_v13 = vmul.f32 %v647_v4, %v599_v61  ;;  %v699_v26 = vmul.f32 %v1994_v42, %v1994_v42  ;;  %v602_v31 = vmul.f32 0.5, %v1937_v54 }
  0x83   :  { %v673_v44 = vadd.f32 %v672_v11, %v1970_v16  ;;  %v709_v12 = vadd.f32 %v708_v59, %v694_v63  ;;  %v649_v28 = vadd.f32 1.0, %v1326_v6  ;;  %v2007_v57 = vmul.f32 %v648_v49, %v600_v30 }
  0x84   :  { %v1328_v48 = vpop.eup %1327  ;;  %v700_v1 = vmul.f32 %v2001_v13, %v2001_v13 }
  0x85   :  { %v674_v39 = vadd.f32 %v673_v44, %v1974_v55  ;;  %v710_v27 = vadd.f32 %v709_v12, %v695_v37  ;;  %v650_v46 = vadd.f32 1.0, %v1328_v48  ;;  %v2012_v17 = vmul.f32 %v649_v28, %v601_v29  ;;  %v807_v48 = vld [vmem:[#allocation2 + $0xa0] sm:$0xff] }
  0x86   :  { %v701_v62 = vmul.f32 %v2007_v57, %v2007_v57  ;;  %v729_v29 = vld [vmem:[%s2421_s3] sm:$0x1] }
  0x87   :  { %v675_v8 = vadd.f32 %v674_v39, %v1980_v56  ;;  %v711_v34 = vadd.f32 %v710_v27, %v696_v22  ;;  %v2017_v51 = vmul.f32 %v650_v46, %v602_v31  ;;  %v702_v14 = vmul.f32 %v2012_v17, %v2012_v17  ;;  %v798_v46 = vld [vmem:[%s2420_s5 + $0x8] sm:$0x7] }
  0x89   :  { %v676_v60 = vadd.f32 %v675_v8, %v1985_v53  ;;  %v712_v47 = vadd.f32 %v711_v34, %v697_v23  ;;  %v703_v11 = vmul.f32 %v2017_v51, %v2017_v51 }
  0x8b   :  { %v677_v50 = vadd.f32 %v676_v60, %v1994_v42  ;;  %v713_v25 = vadd.f32 %v712_v47, %v698_v40  ;;  %v843_v40 = vld [vmem:[#allocation2 + $0xa1] sm:$0xff]  ;;  %v827_v47 = vmul.f32 %v1838_v18, %v807_v48 }
  0x8c   :  { %v797_v60 = vld [vmem:[%s2420_s5 + $0x4] sm:$0x7] }
  0x8d   :  { %v678_v7 = vadd.f32 %v677_v50, %v2001_v13  ;;  %v714_v0 = vadd.f32 %v713_v25, %v699_v26  ;;  %v863_v26 = vmul.f32 %v1841_v10, %v843_v40  ;;  %v895_v50 = vld [vmem:[#allocation2 + $0xa2] sm:$0xff]  ;;  %v733_v25 = vld [vmem:[%s2422_s4] sm:$0x1] }
  0x8f   :  { %v679_v54 = vadd.f32 %v678_v7, %v2007_v57  ;;  %v715_v36 = vadd.f32 %v714_v0, %v700_v1  ;;  %v2042_v0 = vrot.slane %v797_v60, %v2448_v33 }
  0x91   :  { %v680_v58 = vadd.f32 %v679_v54, %v2012_v17  ;;  %v716_v63 = vadd.f32 %v715_v36, %v701_v62  ;;  %v2045_v62 = vrot.slane %v798_v46, %v1403_v9  ;;  %v2048_v54 = vrot.slane %v798_v46, %v2448_v33 }
  0x92   :  { %v879_v36 = vadd.f32 %v863_v26, %v827_v47 }
  0x93   :  { %v681_v59 = vadd.f32 %v680_v58, %v2017_v51  ;;  %v717_v45 = vadd.f32 %v716_v63, %v702_v14  ;;  %v915_v14 = vmul.f32 %v1846_v43, %v895_v50 }
  0x95   :  { %v682_v15 = vrot.slane %v681_v59, 4  ;;  %v718_v41 = vadd.f32 %v717_v45, %v703_v11 }
  0x97   :  { %v683_v37 = vadd.f32 %v682_v15, %v681_v59  ;;  %v719_v44 = vrot.slane %v718_v41, 4 }
  0x99   :  { %v684_v12 = vrot.slane %v683_v37, 2  ;;  %v720_v24 = vadd.f32 %v719_v44, %v718_v41 }
  0x9b   :  { %v685_v22 = vadd.f32 %v684_v12, %v683_v37  ;;  %v721_v35 = vrot.slane %v720_v24, 2 }
  0x9d   :  { %v686_v61 = vrot.slane %v685_v22, 1  ;;  %v722_v4 = vadd.f32 %v721_v35, %v720_v24 }
  0x9f   :  { %v687_v39 = vadd.f32 %v686_v61, %v685_v22  ;;  %v723_v27 = vrot.slane %v722_v4, 1 }
  0xa1   :  { %v724_v6 = vadd.f32 %v723_v27, %v722_v4  ;;  %v725_v23 = vmul.f32 0.0078125, %v687_v39  ;;  %v1154_v4 = vld [vmem:[#allocation2 + $0x91] sm:$0xff] }
  0xa3   :  { %v726_v30 = vmul.f32 0.0078125, %v724_v6  ;;  %v727_v49 = vmul.f32 %v725_v23, %v725_v23 }
  0xa5   :  { %v728_v8 = vsub.f32 %v726_v30, %v727_v49  ;;  %v2094_v30 = vrot.slane %v797_v60, %v1403_v9  ;;  %v2097_v49 = vrot.slane %v797_v60, %v1463_v21 }
  0xa7   :  { %v730_v34 = vadd.f32 1e-05, %v728_v8  ;;  %v2100_v8 = vrot.slane %v798_v46, %v1463_v21  ;;  %v931_v21 = vadd.f32 %v915_v14, %v879_v36 }
  0xa9   :  { %1329 = vrsqrt.f32 %v730_v34 }
  0xb3   :  { %v1330_v28 = vpop.eup %1329 }
  0xb4   :  { %v732_v31 = vmul.f32 %v1330_v28, %v729_v29 }
  0xb6   :  { %v734_v1 = vmul.f32 %v732_v31, %v725_v23  ;;  %v740_v7 = vrot.slane %v732_v31, %v1403_v9 }
  0xb8   :  { %v735_v58 = vsub.f32 %v733_v25, %v734_v1  ;;  %v742_v63 = vmul.f32 %v740_v7, %v1928_v38  ;;  %v743_v11 = vmul.f32 %v740_v7, %v1933_v52  ;;  %v744_v59 = vmul.f32 %v740_v7, %v1931_v5 }
  0xb9   :  { %v745_v45 = vmul.f32 %v740_v7, %v1941_v32  ;;  %v746_v15 = vmul.f32 %v740_v7, %v1948_v20  ;;  %v747_v41 = vmul.f32 %v740_v7, %v1954_v2  ;;  %v748_v37 = vmul.f32 %v740_v7, %v1962_v3 }
  0xba   :  { %v762_v33 = vrot.slane %v735_v58, %v1403_v9  ;;  %v749_v44 = vmul.f32 %v740_v7, %v1970_v16  ;;  %v750_v12 = vmul.f32 %v740_v7, %v1974_v55  ;;  %v751_v38 = vmul.f32 %v740_v7, %v1980_v56 }
  0xbb   :  { %v752_v52 = vmul.f32 %v740_v7, %v1985_v53  ;;  %v753_v5 = vmul.f32 %v740_v7, %v1994_v42  ;;  %v754_v32 = vmul.f32 %v740_v7, %v2001_v13  ;;  %v755_v20 = vmul.f32 %v740_v7, %v2007_v57  ;;  %v1102_v57 = vld [vmem:[#allocation2 + $0x90] sm:$0xff] }
  0xbc   :  { %v764_v24 = vadd.f32 %v762_v33, %v742_v63  ;;  %v765_v2 = vadd.f32 %v762_v33, %v743_v11  ;;  %v766_v22 = vadd.f32 %v762_v33, %v744_v59  ;;  %v767_v3 = vadd.f32 %v762_v33, %v745_v45 }
  0xbd   :  { %v768_v35 = vadd.f32 %v762_v33, %v746_v15  ;;  %v2066_v61 = vadd.f32 %v762_v33, %v747_v41  ;;  %v2068_v16 = vadd.f32 %v762_v33, %v748_v37  ;;  %v2070_v55 = vadd.f32 %v762_v33, %v749_v44 }
  0xbe   :  { %780 = vst [vmem:[#allocation2 + $0x11] sm:$0xff] %v764_v24  ;;  %781 = vst [vmem:[#allocation2 + $0x21] sm:$0xff] %v765_v2  ;;  %v2072_v56 = vadd.f32 %v762_v33, %v750_v12  ;;  %v2074_v53 = vadd.f32 %v762_v33, %v751_v38  ;;  %v2076_v42 = vadd.f32 %v762_v33, %v752_v52 }
  0xbf   :  { %782 = vst [vmem:[#allocation2 + $0x31] sm:$0xff] %v766_v22  ;;  %783 = vst [vmem:[#allocation2 + $0x41] sm:$0xff] %v767_v3  ;;  %v2078_v13 = vadd.f32 %v762_v33, %v753_v5  ;;  %v2083_v39 = vadd.f32 %v762_v33, %v754_v32  ;;  %v2085_v27 = vadd.f32 %v762_v33, %v755_v20 }
  0xc0   :  { %2450 = vst [vmem:[#allocation3_spill] sm:$0xff] %v2074_v53  ;;  %2451 = vst [vmem:[#allocation4_spill] sm:$0xff] %v2076_v42  ;;  %v756_v6 = vmul.f32 %v740_v7, %v2012_v17  ;;  %v757_v23 = vmul.f32 %v740_v7, %v2017_v51  ;;  %v2109_v34 = vmul.f32 %v2045_v62, %v1102_v57 }
  0xc1   :  { %2452 = vst [vmem:[#allocation5_spill] sm:$0xff] %v2078_v13  ;;  %784 = vst [vmem:[#allocation2 + $0x51] sm:$0xff] %v768_v35  ;;  %v2112_v9 = vmul.f32 %v2048_v54, %v1154_v4  ;;  %v1011_v48 = vmul.f32 %v2042_v0, %v764_v24  ;;  %v2116_v40 = vmul.f32 %v2048_v54, %v765_v2 }
  0xc2   :  { %785 = vst [vmem:[#allocation2 + $0x61] sm:$0xff] %v2066_v61  ;;  %786 = vst [vmem:[#allocation2 + $0x71] sm:$0xff] %v2068_v16  ;;  %v2104_v17 = vadd.f32 %v762_v33, %v756_v6  ;;  %v2106_v51 = vadd.f32 %v762_v33, %v757_v23  ;;  %v1019_v29 = vmul.f32 %v2042_v0, %v2072_v56 }
  0xc3   :  { %787 = vst [vmem:[#allocation2 + $0x81] sm:$0xff] %v2070_v55  ;;  %2453 = vst [vmem:[#allocation6_spill] sm:$0xff] %v2083_v39  ;;  %v2124_v28 = vmul.f32 %v2048_v54, %v2074_v53  ;;  %v856_v60 = vmul.f32 %v1841_v10, %v764_v24  ;;  %v1012_v47 = vmul.f32 %v2042_v0, %v765_v2 }
  0xc4   :  { %2454 = vst [vmem:[#allocation7_spill] sm:$0xff] %v2085_v27  ;;  %788 = vst [vmem:[#allocation2 + $0xb1] sm:$0xff] %v2072_v56  ;;  %v2129_v26 = vmul.f32 %v2048_v54, %v766_v22  ;;  %v857_v31 = vmul.f32 %v1841_v10, %v765_v2  ;;  %v2133_v46 = vmul.f32 %v2042_v0, %v766_v22 }
  0xc5   :  { %789 = vst [vmem:[#allocation2 + $0xc1] sm:$0xff] %v2074_v53  ;;  %790 = vst [vmem:[#allocation2 + $0xd1] sm:$0xff] %v2076_v42  ;;  %v2136_v50 = vmul.f32 %v2048_v54, %v767_v3  ;;  %v858_v25 = vmul.f32 %v1841_v10, %v766_v22  ;;  %v939_v1 = vld [vmem:[#allocation2 + $0x10] sm:$0xff]  ;;  %v1095_v36 = vld [vmem:[#allocation2 + $0x20] sm:$0xff]  ;;  %v2140_v14 = vmul.f32 %v2042_v0, %v767_v3 }
  0xc6   :  { %791 = vst [vmem:[#allocation2 + $0xe1] sm:$0xff] %v2078_v13  ;;  %792 = vst [vmem:[#allocation2 + $0xf1] sm:$0xff] %v2083_v39  ;;  %v1043_v7 = vld [vmem:[#allocation2 + $0x12] sm:$0xff]  ;;  %v2143_v58 = vmul.f32 %v2048_v54, %v768_v35  ;;  %v2146_v63 = vmul.f32 %v1841_v10, %v767_v3  ;;  %v2149_v11 = vmul.f32 %v2042_v0, %v768_v35  ;;  %v1199_v45 = vld [vmem:[#allocation2 + $0x22] sm:$0xff] }
  0xc7   :  { %793 = vst [vmem:[#allocation2 + $0x101] sm:$0xff] %v2085_v27  ;;  %2455 = vst [vmem:[#allocation8_spill] sm:$0xff] %v2104_v17  ;;  %v959_v59 = vmul.f32 %v2094_v30, %v939_v1  ;;  %v820_v15 = vmul.f32 %v939_v1, %v1838_v18  ;;  %v2155_v41 = vmul.f32 %v2048_v54, %v2066_v61  ;;  %v1096_v1 = vld [vmem:[#allocation2 + $0x30] sm:$0xff]  ;;  %v1097_v13 = vld [vmem:[#allocation2 + $0x40] sm:$0xff] }
  0xc8   :  { %2456 = vst [vmem:[#allocation9_spill] sm:$0xff] %v2106_v51  ;;  %2457 = vst [vmem:[#allocation10_spill] sm:$0xff] %v2109_v34  ;;  %v2158_v37 = vmul.f32 %v1841_v10, %v768_v35  ;;  %v2164_v44 = vmul.f32 %v2042_v0, %v2066_v61  ;;  %v2168_v12 = vmul.f32 %v2048_v54, %v2068_v16 }
  0xc9   :  { %2458 = vst [vmem:[#allocation11_spill] sm:$0xff] %v2112_v9  ;;  %794 = vst [vmem:[#allocation2 + $0x111] sm:$0xff] %v2104_v17  ;;  %v2172_v38 = vmul.f32 %v1841_v10, %v2066_v61  ;;  %v2176_v52 = vmul.f32 %v2042_v0, %v2068_v16  ;;  %v975_v5 = vadd.f32 %v959_v59, %v1869_v19  ;;  %v1200_v59 = vld [vmem:[#allocation2 + $0x32] sm:$0xff] }
  0xca   :  { %795 = vst [vmem:[#allocation2 + $0x121] sm:$0xff] %v2106_v51  ;;  %v1063_v32 = vmul.f32 %v2097_v49, %v1043_v7  ;;  %v1115_v20 = vmul.f32 %v2045_v62, %v1095_v36  ;;  %v1219_v35 = vmul.f32 %v2100_v8, %v1199_v45  ;;  %v872_v61 = vadd.f32 %v856_v60, %v820_v15 }
  0xcb   :  { %v2160_v33 = vld [vmem:[#allocation2 + $0xb0] sm:$0xff]  ;;  %v908_v57 = vmul.f32 %v1043_v7, %v1846_v43  ;;  %v960_v19 = vmul.f32 %v1095_v36, %v2094_v30  ;;  %v1027_v4 = vadd.f32 %v1011_v48, %v975_v5  ;;  %v1064_v23 = vmul.f32 %v1199_v45, %v2097_v49 }
  0xcc   :  { %v967_v24 = vmul.f32 %v2094_v30, %v2160_v33  ;;  %v2183_v2 = vld [vmem:[#allocation2 + $0xb2] sm:$0xff]  ;;  %v2185_v22 = vld [vmem:[#allocation2 + $0xc0] sm:$0xff]  ;;  %v821_v51 = vmul.f32 %v1095_v36, %v1838_v18  ;;  %v1220_v36 = vmul.f32 %v2100_v8, %v1200_v59  ;;  %v822_v9 = vmul.f32 %v1096_v1, %v1838_v18 }
  0xcd   :  { %2459 = vst [vmem:[#allocation12_spill] sm:$0xff] %v2185_v22  ;;  %v2187_v3 = vld [vmem:[#allocation2 + $0xc2] sm:$0xff]  ;;  %v1071_v17 = vmul.f32 %v2097_v49, %v2183_v2  ;;  %v1123_v27 = vmul.f32 %v2045_v62, %v2185_v22  ;;  %v924_v7 = vadd.f32 %v908_v57, %v872_v61  ;;  %v1079_v15 = vadd.f32 %v1063_v32, %v1027_v4 }
  0xce   :  { %2460 = vst [vmem:[#allocation13_spill] sm:$0xff] %v2187_v3  ;;  %v983_v6 = vadd.f32 %v967_v24, %v931_v21  ;;  %v1227_v60 = vmul.f32 %v2100_v8, %v2187_v3  ;;  %v873_v48 = vadd.f32 %v857_v31, %v821_v51  ;;  %v909_v21 = vmul.f32 %v1199_v45, %v1846_v43  ;;  %v1201_v3 = vld [vmem:[#allocation2 + $0x42] sm:$0xff] }
  0xcf   :  { %v976_v5 = vadd.f32 %v960_v19, %v924_v7  ;;  %v1116_v24 = vmul.f32 %v2045_v62, %v1096_v1  ;;  %v1131_v42 = vadd.f32 %v1115_v20, %v1079_v15  ;;  %v961_v22 = vmul.f32 %v1096_v1, %v2094_v30  ;;  %v1098_v19 = vld [vmem:[#allocation2 + $0x50] sm:$0xff] }
  0xd0   :  { %v1035_v39 = vadd.f32 %v1019_v29, %v983_v6  ;;  %v925_v53 = vadd.f32 %v909_v21, %v873_v48  ;;  %v1065_v29 = vmul.f32 %v1200_v59, %v2097_v49  ;;  %v874_v51 = vadd.f32 %v858_v25, %v822_v9  ;;  %v1202_v7 = vld [vmem:[#allocation2 + $0x52] sm:$0xff] }
  0xd1   :  { %v1028_v61 = vadd.f32 %v1012_v47, %v976_v5  ;;  %v910_v31 = vmul.f32 %v1200_v59, %v1846_v43  ;;  %v1183_v45 = vadd.f32 %v2116_v40, %v1131_v42  ;;  %v823_v4 = vmul.f32 %v1097_v13, %v1838_v18  ;;  %v1099_v5 = vld [vmem:[#allocation2 + $0x60] sm:$0xff] }
  0xd2   :  { %v1087_v34 = vadd.f32 %v1071_v17, %v1035_v39  ;;  %v977_v57 = vadd.f32 %v961_v22, %v925_v53  ;;  %v2212_v39 = vld [vmem:[%s2423_s6] ss:$0 sm:$0xff]  ;;  %v962_v47 = vmul.f32 %v1097_v13, %v2094_v30  ;;  %v911_v9 = vmul.f32 %v1201_v3, %v1846_v43 }
  0xd3   :  { %v1080_v17 = vadd.f32 %v1064_v23, %v1028_v61  ;;  %v926_v20 = vadd.f32 %v910_v31, %v874_v51  ;;  %v1235_v25 = vadd.f32 %v1219_v35, %v1183_v45  ;;  %v875_v53 = vadd.f32 %v2146_v63, %v823_v4 }
  0xd4   :  { %v1139_v32 = vadd.f32 %v1123_v27, %v1087_v34  ;;  %v1029_v42 = vadd.f32 %v2133_v46, %v977_v57  ;;  %v1117_v34 = vmul.f32 %v2045_v62, %v1097_v13  ;;  %v963_v22 = vmul.f32 %v1098_v19, %v2094_v30 }
  0xd5   :  { %v1132_v27 = vadd.f32 %v1116_v24, %v1080_v17  ;;  %v978_v40 = vadd.f32 %v962_v47, %v926_v20  ;;  %v1258_v23 = vadd.f32 %v2212_v39, %v1235_v25  ;;  %v927_v15 = vadd.f32 %v911_v9, %v875_v53  ;;  %v1100_v47 = vld [vmem:[#allocation2 + $0x70] sm:$0xff] }
  0xd6   :  { %v1191_v6 = vadd.f32 %v2124_v28, %v1139_v32  ;;  %v1081_v59 = vadd.f32 %v1065_v29, %v1029_v42  ;;  %v1066_v46 = vmul.f32 %v1201_v3, %v2097_v49  ;;  %v824_v63 = vmul.f32 %v1098_v19, %v1838_v18  ;;  %v1203_v32 = vld [vmem:[#allocation2 + $0x62] sm:$0xff] }
  0xd7   :  { %v1184_v35 = vadd.f32 %v2129_v26, %v1132_v27  ;;  %v1030_v28 = vadd.f32 %v2140_v14, %v978_v40  ;;  %1274 = vst [vmem:[%s2424_s7] sm:$0xff] %v1258_v23  ;;  %v979_v21 = vadd.f32 %v963_v22, %v927_v15  ;;  %v912_v14 = vmul.f32 %v1202_v7, %v1846_v43  ;;  %v1204_v23 = vld [vmem:[#allocation2 + $0x72] sm:$0xff] }
  0xd8   :  { %v1243_v1 = vadd.f32 %v1227_v60, %v1191_v6  ;;  %v1133_v48 = vadd.f32 %v1117_v34, %v1081_v59  ;;  %v1118_v60 = vmul.f32 %v2045_v62, %v1098_v19  ;;  %v876_v26 = vadd.f32 %v2158_v37, %v824_v63 }
  0xd9   :  { %v1236_v24 = vadd.f32 %v1220_v36, %v1184_v35  ;;  %v1082_v61 = vadd.f32 %v1066_v46, %v1030_v28  ;;  %v1221_v51 = vmul.f32 %v2100_v8, %v1201_v3  ;;  %v1031_v31 = vadd.f32 %v2149_v11, %v979_v21  ;;  %v1101_v28 = vld [vmem:[#allocation2 + $0x80] sm:$0xff] }
  0xda   :  { %v1266_v13 = vadd.f32 %v2212_v39, %v1243_v1  ;;  %v1185_v29 = vadd.f32 %v2136_v50, %v1133_v48  ;;  %v1067_v45 = vmul.f32 %v1202_v7, %v2097_v49  ;;  %v928_v19 = vadd.f32 %v912_v14, %v876_v26 }
  0xdb   :  { %v1259_v36 = vadd.f32 %v2212_v39, %v1236_v24  ;;  %v1134_v57 = vadd.f32 %v1118_v60, %v1082_v61  ;;  %v964_v37 = vmul.f32 %v1099_v5, %v2094_v30  ;;  %v1119_v20 = vmul.f32 %v2045_v62, %v1099_v5 }
  0xdc   :  { %1282 = vst [vmem:[%s2424_s7 + $0x40] sm:$0xff] %v1266_v13  ;;  %v1237_v4 = vadd.f32 %v1221_v51, %v1185_v29  ;;  %v1083_v17 = vadd.f32 %v1067_v45, %v1031_v31  ;;  %v825_v50 = vmul.f32 %v1099_v5, %v1838_v18  ;;  %v1222_v3 = vmul.f32 %v2100_v8, %v1202_v7  ;;  %v1205_v31 = vld [vmem:[#allocation2 + $0x82] sm:$0xff] }
  0xdd   :  { %1275 = vst [vmem:[%s2424_s7 + $0x8] sm:$0xff] %v1259_v36  ;;  %v1186_v11 = vadd.f32 %v2143_v58, %v1134_v57  ;;  %v1223_v9 = vmul.f32 %v2100_v8, %v1203_v32  ;;  %v980_v25 = vadd.f32 %v964_v37, %v928_v19  ;;  %v913_v27 = vmul.f32 %v1203_v32, %v1846_v43  ;;  %v2461_v19 = vld [vmem:[#allocation12_spill] sm:$0xff] }
  0xde   :  { %v1260_v6 = vadd.f32 %v2212_v39, %v1237_v4  ;;  %v1135_v42 = vadd.f32 %v1119_v20, %v1083_v17  ;;  %v877_v53 = vadd.f32 %v2172_v38, %v825_v50  ;;  %v1068_v22 = vmul.f32 %v1203_v32, %v2097_v49  ;;  %v1104_v50 = vld [vmem:[#allocation2 + $0xd0] sm:$0xff] }
  0xdf   :  { %v1238_v34 = vadd.f32 %v1222_v3, %v1186_v11  ;;  %v1032_v40 = vadd.f32 %v2164_v44, %v980_v25  ;;  %v826_v58 = vmul.f32 %v1100_v47, %v1838_v18  ;;  %v965_v7 = vmul.f32 %v1100_v47, %v2094_v30  ;;  %v2462_v11 = vld [vmem:[#allocation3_spill] sm:$0xff] }
  0xe0   :  { %1276 = vst [vmem:[%s2424_s7 + $0x10] sm:$0xff] %v1260_v6  ;;  %v1187_v1 = vadd.f32 %v2155_v41, %v1135_v42  ;;  %v929_v59 = vadd.f32 %v913_v27, %v877_v53  ;;  %v862_v38 = vmul.f32 %v1841_v10, %v2068_v16  ;;  %v1120_v35 = vmul.f32 %v2045_v62, %v1100_v47  ;;  %v1206_v47 = vld [vmem:[#allocation2 + $0x92] sm:$0xff] }
  0xe1   :  { %v1261_v15 = vadd.f32 %v2212_v39, %v1238_v34  ;;  %v1084_v44 = vadd.f32 %v1068_v22, %v1032_v40  ;;  %v1173_v46 = vmul.f32 %v2048_v54, %v2070_v55  ;;  %v914_v41 = vmul.f32 %v1204_v23, %v1846_v43  ;;  %v2463_v34 = vld [vmem:[#allocation13_spill] sm:$0xff] }
  0xe2   :  { %v1239_v63 = vadd.f32 %v1223_v9, %v1187_v1  ;;  %v981_v13 = vadd.f32 %v965_v7, %v929_v59  ;;  %v878_v48 = vadd.f32 %v862_v38, %v826_v58  ;;  %v1069_v16 = vmul.f32 %v1204_v23, %v2097_v49  ;;  %v2464_v7 = vld [vmem:[#allocation10_spill] sm:$0xff] }
  0xe3   :  { %1277 = vst [vmem:[%s2424_s7 + $0x18] sm:$0xff] %v1261_v15  ;;  %v1136_v60 = vadd.f32 %v1120_v35, %v1084_v44  ;;  %v828_v21 = vmul.f32 %v2160_v33, %v1838_v18  ;;  %v864_v5 = vmul.f32 %v1841_v10, %v2072_v56  ;;  %v966_v14 = vmul.f32 %v1101_v28, %v2094_v30  ;;  %v1208_v15 = vld [vmem:[#allocation2 + $0xd2] sm:$0xff] }
  0xe4   :  { %v1262_v24 = vadd.f32 %v2212_v39, %v1239_v63  ;;  %v1033_v61 = vadd.f32 %v2176_v52, %v981_v13  ;;  %v930_v26 = vadd.f32 %v914_v41, %v878_v48  ;;  %v1224_v51 = vmul.f32 %v2100_v8, %v1204_v23  ;;  %v2465_v63 = vld [vmem:[#allocation4_spill] sm:$0xff]  ;;  %v1105_v48 = vld [vmem:[#allocation2 + $0xe0] sm:$0xff] }
  0xe5   :  { %v1188_v29 = vadd.f32 %v2168_v12, %v1136_v60  ;;  %v880_v45 = vadd.f32 %v864_v5, %v828_v21  ;;  %v916_v32 = vmul.f32 %v2183_v2, %v1846_v43  ;;  %v1121_v33 = vmul.f32 %v2045_v62, %v1101_v28 }
  0xe6   :  { %1278 = vst [vmem:[%s2424_s7 + $0x20] sm:$0xff] %v1262_v24  ;;  %v1085_v56 = vadd.f32 %v1069_v16, %v1033_v61  ;;  %v982_v52 = vadd.f32 %v966_v14, %v930_v26  ;;  %v1018_v36 = vmul.f32 %v2042_v0, %v2070_v55  ;;  %v968_v37 = vmul.f32 %v2461_v19, %v2094_v30  ;;  %v2466_v16 = vld [vmem:[#allocation11_spill] sm:$0xff] }
  0xe7   :  { %v1240_v57 = vadd.f32 %v1224_v51, %v1188_v29  ;;  %v932_v12 = vadd.f32 %v916_v32, %v880_v45  ;;  %v829_v4 = vmul.f32 %v2461_v19, %v1838_v18  ;;  %v1070_v20 = vmul.f32 %v1205_v31, %v2097_v49  ;;  %v1209_v32 = vld [vmem:[#allocation2 + $0xe2] sm:$0xff] }
  0xe8   :  { %v1137_v2 = vadd.f32 %v1121_v33, %v1085_v56  ;;  %v1034_v17 = vadd.f32 %v1018_v36, %v982_v52  ;;  %v865_v3 = vmul.f32 %v1841_v10, %v2462_v11  ;;  %v1225_v55 = vmul.f32 %v2100_v8, %v1205_v31 }
  0xe9   :  { %v1263_v9 = vadd.f32 %v2212_v39, %v1240_v57  ;;  %v984_v25 = vadd.f32 %v968_v37, %v932_v12  ;;  %v1020_v6 = vmul.f32 %v2042_v0, %v2462_v11  ;;  %v917_v40 = vmul.f32 %v2463_v34, %v1846_v43  ;;  %v2467_v57 = vld [vmem:[#allocation5_spill] sm:$0xff] }
  0xea   :  { %v1189_v42 = vadd.f32 %v1173_v46, %v1137_v2  ;;  %v1086_v53 = vadd.f32 %v1070_v20, %v1034_v17  ;;  %v881_v27 = vadd.f32 %v865_v3, %v829_v4  ;;  %v1226_v22 = vmul.f32 %v2100_v8, %v1206_v47  ;;  %v1106_v17 = vld [vmem:[#allocation2 + $0xf0] sm:$0xff] }
  0xeb   :  { %1279 = vst [vmem:[%s2424_s7 + $0x28] sm:$0xff] %v1263_v9  ;;  %v1036_v23 = vadd.f32 %v1020_v6, %v984_v25  ;;  %v1072_v58 = vmul.f32 %v2463_v34, %v2097_v49  ;;  %v969_v1 = vmul.f32 %v1104_v50, %v2094_v30  ;;  %v830_v35 = vmul.f32 %v1104_v50, %v1838_v18 }
  0xec   :  { %v1241_v59 = vadd.f32 %v1225_v55, %v1189_v42  ;;  %v1138_v38 = vadd.f32 %v2464_v7, %v1086_v53  ;;  %v933_v44 = vadd.f32 %v917_v40, %v881_v27  ;;  %v1124_v46 = vmul.f32 %v2045_v62, %v1104_v50  ;;  %v1210_v42 = vld [vmem:[#allocation2 + $0xf2] sm:$0xff] }
  0xed   :  { %v1088_v28 = vadd.f32 %v1072_v58, %v1036_v23  ;;  %v1176_v13 = vmul.f32 %v2048_v54, %v2465_v63  ;;  %v866_v41 = vmul.f32 %v1841_v10, %v2465_v63  ;;  %v1021_v24 = vmul.f32 %v2042_v0, %v2465_v63  ;;  %v2468_v58 = vld [vmem:[#allocation6_spill] sm:$0xff] }
  0xee   :  { %v1264_v60 = vadd.f32 %v2212_v39, %v1241_v59  ;;  %v1190_v21 = vadd.f32 %v2466_v16, %v1138_v38  ;;  %v985_v5 = vadd.f32 %v969_v1, %v933_v44  ;;  %v1228_v26 = vmul.f32 %v2100_v8, %v1208_v15 }
  0xef   :  { %v1140_v61 = vadd.f32 %v1124_v46, %v1088_v28  ;;  %v882_v14 = vadd.f32 %v866_v41, %v830_v35  ;;  %v918_v29 = vmul.f32 %v1208_v15, %v1846_v43  ;;  %v1073_v45 = vmul.f32 %v1208_v15, %v2097_v49  ;;  %v1211_v41 = vld [vmem:[#allocation2 + $0x102] sm:$0xff] }
  0xf0   :  { %1280 = vst [vmem:[%s2424_s7 + $0x30] sm:$0xff] %v1264_v60  ;;  %v1242_v51 = vadd.f32 %v1226_v22, %v1190_v21  ;;  %v1037_v31 = vadd.f32 %v1021_v24, %v985_v5  ;;  %v970_v56 = vmul.f32 %v1105_v48, %v2094_v30  ;;  %v831_v36 = vmul.f32 %v1105_v48, %v1838_v18  ;;  %v1107_v22 = vld [vmem:[#allocation2 + $0x100] sm:$0xff] }
  0xf1   :  { %v1192_v33 = vadd.f32 %v1176_v13, %v1140_v61  ;;  %v934_v52 = vadd.f32 %v918_v29, %v882_v14  ;;  %v867_v12 = vmul.f32 %v1841_v10, %v2467_v57  ;;  %v1125_v4 = vmul.f32 %v2045_v62, %v1105_v48  ;;  %v2469_v24 = vld [vmem:[#allocation7_spill] sm:$0xff] }
  0xf2   :  { %v1265_v19 = vadd.f32 %v2212_v39, %v1242_v51  ;;  %v1089_v37 = vadd.f32 %v1073_v45, %v1037_v31  ;;  %v1022_v2 = vmul.f32 %v2042_v0, %v2467_v57  ;;  %v919_v11 = vmul.f32 %v1209_v32, %v1846_v43  ;;  %v1108_v31 = vld [vmem:[#allocation2 + $0x110] sm:$0xff] }
  0xf3   :  { %v1244_v20 = vadd.f32 %v1228_v26, %v1192_v33  ;;  %v986_v47 = vadd.f32 %v970_v56, %v934_v52  ;;  %v883_v50 = vadd.f32 %v867_v12, %v831_v36  ;;  %v1177_v9 = vmul.f32 %v2048_v54, %v2467_v57 }
  0xf4   :  { %1281 = vst [vmem:[%s2424_s7 + $0x38] sm:$0xff] %v1265_v19  ;;  %v1141_v3 = vadd.f32 %v1125_v4, %v1089_v37  ;;  %v1074_v55 = vmul.f32 %v1209_v32, %v2097_v49  ;;  %v971_v27 = vmul.f32 %v1106_v17, %v2094_v30  ;;  %v1229_v40 = vmul.f32 %v2100_v8, %v1209_v32  ;;  %v1212_v37 = vld [vmem:[#allocation2 + $0x112] sm:$0xff] }
  0xf5   :  { %v1267_v25 = vadd.f32 %v2212_v39, %v1244_v20  ;;  %v1038_v6 = vadd.f32 %v1022_v2, %v986_v47  ;;  %v935_v53 = vadd.f32 %v919_v11, %v883_v50  ;;  %v832_v23 = vmul.f32 %v1106_v17, %v1838_v18  ;;  %v2470_v11 = vld [vmem:[#allocation8_spill] sm:$0xff] }
  0xf6   :  { %v1193_v34 = vadd.f32 %v1177_v9, %v1141_v3  ;;  %v868_v1 = vmul.f32 %v1841_v10, %v2468_v58  ;;  %v1126_v7 = vmul.f32 %v2045_v62, %v1106_v17  ;;  %v1023_v15 = vmul.f32 %v2042_v0, %v2468_v58 }
  0xf7   :  { %1283 = vst [vmem:[%s2424_s7 + $0x48] sm:$0xff] %v1267_v25  ;;  %v1090_v59 = vadd.f32 %v1074_v55, %v1038_v6  ;;  %v987_v38 = vadd.f32 %v971_v27, %v935_v53  ;;  %v1178_v35 = vmul.f32 %v2048_v54, %v2468_v58  ;;  %v920_v46 = vmul.f32 %v1210_v42, %v1846_v43 }
  0xf8   :  { %v1245_v44 = vadd.f32 %v1229_v40, %v1193_v34  ;;  %v884_v28 = vadd.f32 %v868_v1, %v832_v23  ;;  %v1075_v48 = vmul.f32 %v1210_v42, %v2097_v49  ;;  %v972_v60 = vmul.f32 %v1107_v22, %v2094_v30 }
  0xf9   :  { %v1142_v63 = vadd.f32 %v1126_v7, %v1090_v59  ;;  %v1039_v13 = vadd.f32 %v1023_v15, %v987_v38  ;;  %v833_v5 = vmul.f32 %v1107_v22, %v1838_v18  ;;  %v869_v61 = vmul.f32 %v1841_v10, %v2469_v24 }
  0xfa   :  { %v1268_v16 = vadd.f32 %v2212_v39, %v1245_v44  ;;  %v936_v21 = vadd.f32 %v920_v46, %v884_v28  ;;  %v1230_v14 = vmul.f32 %v2100_v8, %v1210_v42  ;;  %v1127_v51 = vmul.f32 %v2045_v62, %v1107_v22  ;;  %v1109_v42 = vld [vmem:[#allocation2 + $0x120] sm:$0xff] }
  0xfb   :  { %v1194_v26 = vadd.f32 %v1178_v35, %v1142_v63  ;;  %v1091_v29 = vadd.f32 %v1075_v48, %v1039_v13  ;;  %v1024_v32 = vmul.f32 %v2042_v0, %v2469_v24  ;;  %v885_v56 = vadd.f32 %v869_v61, %v833_v5  ;;  %v1213_v44 = vld [vmem:[#allocation2 + $0x122] sm:$0xff]  ;;  %v2471_v35 = vld [vmem:[#allocation9_spill] sm:$0xff] }
  0xfc   :  { %1284 = vst [vmem:[%s2424_s7 + $0x50] sm:$0xff] %v1268_v16  ;;  %v988_v45 = vadd.f32 %v972_v60, %v936_v21  ;;  %v921_v33 = vmul.f32 %v1211_v41, %v1846_v43  ;;  %v1179_v57 = vmul.f32 %v2048_v54, %v2469_v24  ;;  %v1076_v12 = vmul.f32 %v1211_v41, %v2097_v49  ;;  %v1110_v13 = vld [vmem:[#allocation2 + $0x130] sm:$0xff] }
  0xfd   :  { %v1246_v52 = vadd.f32 %v1230_v14, %v1194_v26  ;;  %v1143_v36 = vadd.f32 %v1127_v51, %v1091_v29  ;;  %v973_v2 = vmul.f32 %v1108_v31, %v2094_v30  ;;  %v834_v17 = vmul.f32 %v1108_v31, %v1838_v18  ;;  %v1162_v5 = vld [vmem:[#allocation2 + $0x131] sm:$0xff] }
  0xfe   :  { %v1040_v19 = vadd.f32 %v1024_v32, %v988_v45  ;;  %v937_v4 = vadd.f32 %v921_v33, %v885_v56  ;;  %v1231_v50 = vmul.f32 %v2100_v8, %v1211_v41  ;;  %v870_v3 = vmul.f32 %v1841_v10, %v2470_v11  ;;  %v1214_v26 = vld [vmem:[#allocation2 + $0x132] sm:$0xff] }
  0xff   :  { %v1269_v20 = vadd.f32 %v2212_v39, %v1246_v52  ;;  %v1195_v47 = vadd.f32 %v1179_v57, %v1143_v36  ;;  %v1128_v55 = vmul.f32 %v2045_v62, %v1108_v31  ;;  %v1025_v6 = vmul.f32 %v2042_v0, %v2470_v11 }
 0x100   :  { %v1092_v9 = vadd.f32 %v1076_v12, %v1040_v19  ;;  %v989_v25 = vadd.f32 %v973_v2, %v937_v4  ;;  %v886_v53 = vadd.f32 %v870_v3, %v834_v17  ;;  %v922_v27 = vmul.f32 %v1212_v37, %v1846_v43 }
 0x101   :  { %1285 = vst [vmem:[%s2424_s7 + $0x58] sm:$0xff] %v1269_v20  ;;  %v1247_v18 = vadd.f32 %v1231_v50, %v1195_v47  ;;  %v1180_v10 = vmul.f32 %v2048_v54, %v2470_v11  ;;  %v1077_v22 = vmul.f32 %v1212_v37, %v2097_v49  ;;  %v974_v1 = vmul.f32 %v1109_v42, %v2094_v30 }
 0x102   :  { %v1144_v34 = vadd.f32 %v1128_v55, %v1092_v9  ;;  %v1041_v40 = vadd.f32 %v1025_v6, %v989_v25  ;;  %v938_v58 = vadd.f32 %v922_v27, %v886_v53  ;;  %v1232_v7 = vmul.f32 %v2100_v8, %v1212_v37 }
 0x103   :  { %v1270_v23 = vadd.f32 %v2212_v39, %v1247_v18  ;;  %v1129_v15 = vmul.f32 %v2045_v62, %v1109_v42  ;;  %v1026_v28 = vmul.f32 %v2042_v0, %v2471_v35  ;;  %v1181_v30 = vmul.f32 %v2048_v54, %v2471_v35 }
 0x104   :  { %v1196_v59 = vadd.f32 %v1180_v10, %v1144_v34  ;;  %v1093_v38 = vadd.f32 %v1077_v22, %v1041_v40  ;;  %v990_v43 = vadd.f32 %v974_v1, %v938_v58  ;;  %v1078_v41 = vmul.f32 %v1213_v44, %v2097_v49 }
 0x105   :  { %1286 = vst [vmem:[%s2424_s7 + $0x60] sm:$0xff] %v1270_v23  ;;  %v1233_v21 = vmul.f32 %v2100_v8, %v1213_v44  ;;  %v1130_v61 = vmul.f32 %v2045_v62, %v1110_v13  ;;  %v1182_v29 = vmul.f32 %v2048_v54, %v1162_v5  ;;  %v1234_v31 = vmul.f32 %v2100_v8, %v1214_v26 }
 0x106   :  { %v1248_v46 = vadd.f32 %v1232_v7, %v1196_v59  ;;  %v1145_v63 = vadd.f32 %v1129_v15, %v1093_v38  ;;  %v1042_v48 = vadd.f32 %v1026_v28, %v990_v43 }
 0x108   :  { %v1271_v60 = vadd.f32 %v2212_v39, %v1248_v46  ;;  %v1197_v16 = vadd.f32 %v1181_v30, %v1145_v63  ;;  %v1094_v24 = vadd.f32 %v1078_v41, %v1042_v48 }
 0x10a   :  { %1287 = vst [vmem:[%s2424_s7 + $0x68] sm:$0xff] %v1271_v60  ;;  %v1249_v0 = vadd.f32 %v1233_v21, %v1197_v16  ;;  %v1146_v14 = vadd.f32 %v1130_v61, %v1094_v24 }
 0x10c   :  { %v1272_v49 = vadd.f32 %v2212_v39, %v1249_v0  ;;  %v1198_v51 = vadd.f32 %v1182_v29, %v1146_v14 }
 0x10e   :  { %1288 = vst [vmem:[%s2424_s7 + $0x70] sm:$0xff] %v1272_v49  ;;  %v1250_v45 = vadd.f32 %v1234_v31, %v1198_v51 }
 0x110   :  { %v1273_v62 = vadd.f32 %v2212_v39, %v1250_v45 }
 0x112   :  { %1289 = vst [vmem:[%s2424_s7 + $0x78] sm:$0xff] %v1273_v62 }

</bundles_post_ra>
